<compile_context>
chip_gen: v7x
topology: tpu7x:2x2x1
jax: 0.10.0
libtpu: 0.0.40
codegen_flags: <defaults>
</compile_context>

<pallas_src>
import math
import functools

import jax
import jax.numpy as jnp
from jax import lax
from jax.experimental import pallas as pl
from jax.experimental.pallas import tpu as pltpu


# --------------------------------------------------------------------------
# Kernel
# --------------------------------------------------------------------------
def _layer_norm(x, gamma, beta, eps=1e-5):
    mu = jnp.mean(x, axis=-1, keepdims=True)
    var = jnp.mean((x - mu) ** 2, axis=-1, keepdims=True)
    return (x - mu) * lax.rsqrt(var + eps) * gamma + beta


_PER_BLOCK = 14  # weights per transformer block, in flattening order


def sakt_fused_kernel(q_ref, x_ref, *refs, num_blocks, num_heads):
    """Fused SAKT forward for one batch chunk:
    num_blocks x (causal MHA + residual-on-query LayerNorm + FFN + residual LayerNorm),
    then the sigmoid prediction head."""
    o_ref = refs[-1]
    w = refs[:-1]

    bb, S, E = x_ref.shape
    H = num_heads
    Dh = E // H
    N = bb * S

    qv = q_ref[...].astype(jnp.float32).reshape(N, E)   # query (exercise emb)
    x = x_ref[...].astype(jnp.float32).reshape(N, E)    # key/value (interaction emb)

    # ut_mask: strictly-upper-triangular (future) positions masked out.
    row = lax.broadcasted_iota(jnp.int32, (S, S), 0)
    col = lax.broadcasted_iota(jnp.int32, (S, S), 1)
    future = col > row
    neg = jnp.float32(-1e30)

    for blk in range(num_blocks):
        (wq, bq, wkv, bkv, wo, bo, g1, be1, w1, b1, w2, b2, g2, be2) = [
            w[blk * _PER_BLOCK + i][...] for i in range(_PER_BLOCK)]

        # projections: q-proj has 1/sqrt(Dh) pre-folded; K and V fused in one matmul.
        qp = jnp.dot(qv, wq, preferred_element_type=jnp.float32) + bq      # (N, E)
        kv = jnp.dot(x, wkv, preferred_element_type=jnp.float32) + bkv     # (N, 2E)

        attn_rows = []
        for b in range(bb):                          # static; bb is 1 or B//2
            rs = slice(b * S, (b + 1) * S)
            acc = jnp.zeros((S, E), jnp.float32)
            for h in range(H):                       # static unroll over heads
                lo, hi = h * Dh, (h + 1) * Dh
                qh = qp[rs, lo:hi]
                kh = kv[rs, lo:hi]
                vh = kv[rs, E + lo:E + hi]
                s = jnp.dot(qh, kh.T, preferred_element_type=jnp.float32)  # (S, S)
                s = jnp.where(future, neg, s)
                s = s - jnp.max(s, axis=-1, keepdims=True)
                p = jnp.exp(s)
                p = p * pl.reciprocal(jnp.sum(p, axis=-1, keepdims=True), approx=True)
                ho = jnp.dot(p, vh, preferred_element_type=jnp.float32)    # (S, Dh)
                # concat folded into the output projection
                acc = acc + jnp.dot(ho, wo[lo:hi, :],
                                    preferred_element_type=jnp.float32)
            attn_rows.append(acc)
        attn = attn_rows[0] if bb == 1 else jnp.concatenate(attn_rows, axis=0)
        attn = attn + bo                                                   # (N, E)

        # attn_layer_norm(q + attn): residual is against the *query*, as in PyTorch.
        y = _layer_norm(qv + attn, g1, be1)

        # transformer_FFN: Linear -> ReLU -> (Dropout=id) -> Linear
        hdd = jnp.maximum(jnp.dot(y, w1, preferred_element_type=jnp.float32) + b1, 0.0)
        f = jnp.dot(hdd, w2, preferred_element_type=jnp.float32) + b2

        x = _layer_norm(y + f, g2, be2)

    # prediction head: sigmoid(x @ pred_w^T + pred_b), stored with S on the lane axis.
    pred_w = w[num_blocks * _PER_BLOCK][...]        # (1, E)
    pred_b = w[num_blocks * _PER_BLOCK + 1][...]    # (1, 1)
    logit = lax.dot_general(pred_w, x, (((1,), (1,)), ((), ())),
                            preferred_element_type=jnp.float32) + pred_b   # (1, N)
    prob = jax.nn.sigmoid(logit)
    o_ref[...] = prob.reshape(bb, 1, S).astype(o_ref.dtype)


# --------------------------------------------------------------------------
# Wrapper (single pallas_call for the whole transformer stack + pred head)
# --------------------------------------------------------------------------
def _const_spec(arr):
    n = arr.ndim
    return pl.BlockSpec(arr.shape, lambda g, _n=n: (0,) * _n)


def sakt_fused(qshftemb, xemb, flat_weights, *, num_blocks, num_heads):
    B, S, E = xemb.shape
    G = math.gcd(B, 2)          # 2 grid steps when B is even (v7x megacore), else 1
    bb = B // G
    act_spec = pl.BlockSpec((bb, S, E), lambda g: (g, 0, 0))
    out = pl.pallas_call(
        functools.partial(sakt_fused_kernel,
                          num_blocks=num_blocks, num_heads=num_heads),
        out_shape=jax.ShapeDtypeStruct((B, 1, S), jnp.float32),
        grid=(G,),
        in_specs=[act_spec, act_spec] + [_const_spec(a) for a in flat_weights],
        out_specs=pl.BlockSpec((bb, 1, S), lambda g: (g, 0, 0)),
        compiler_params=pltpu.CompilerParams(dimension_semantics=("parallel",)),
    )(qshftemb, xemb, *flat_weights)
    return out[:, 0, :]                                                    # (B, S)


# --------------------------------------------------------------------------
# Parameter init: PyTorch-style shapes, transformed once to kernel layout
# ((in, out) weights, fused KV, attention scale folded into q-projection).
# --------------------------------------------------------------------------
def init_params(key, num_skills, seq_len, emb_size, num_heads, num_blocks):
    E = emb_size
    scale = 1.0 / math.sqrt(E // num_heads)

    def nrm(k, shape, s=0.05):
        return (s * jax.random.normal(k, shape)).astype(jnp.float32)

    keys = jax.random.split(key, 4 + num_blocks)
    params = {
        "interaction_emb": nrm(keys[0], (num_skills * 2, E)),
        "exercise_emb": nrm(keys[1], (num_skills, E)),
        "position_emb": nrm(keys[2], (seq_len, E)),
        "pred_w": nrm(keys[3], (1, E)),                 # Linear(E, 1) weight (1, E)
        "pred_b": jnp.zeros((1, 1), jnp.float32),
        "blocks": [],
    }
    for i in range(num_blocks):
        bk = jax.random.split(keys[4 + i], 4)
        w_in = nrm(bk[0], (3 * E, E))                   # MHA in_proj_weight (PyTorch)
        b_in = jnp.zeros((3 * E,), jnp.float32)
        w_out = nrm(bk[1], (E, E))                      # MHA out_proj.weight
        w1 = nrm(bk[2], (E, E))                         # FFN Linear 1
        w2 = nrm(bk[3], (E, E))                         # FFN Linear 2
        params["blocks"].append({
            "wq":  (w_in[:E, :].T * scale),             # (E, E), scale pre-folded
            "bq":  (b_in[:E] * scale).reshape(1, E),
            "wkv": w_in[E:, :].T,                       # (E, 2E), fused K/V projection
            "bkv": b_in[E:].reshape(1, 2 * E),
            "wo":  w_out.T,                             # (E, E) in (in, out) layout
            "bo":  jnp.zeros((1, E), jnp.float32),
            "ln1_g": jnp.ones((1, E), jnp.float32),
            "ln1_b": jnp.zeros((1, E), jnp.float32),
            "w1": w1.T, "b1": jnp.zeros((1, E), jnp.float32),
            "w2": w2.T, "b2": jnp.zeros((1, E), jnp.float32),
            "ln2_g": jnp.ones((1, E), jnp.float32),
            "ln2_b": jnp.zeros((1, E), jnp.float32),
        })
    return params


_BLOCK_KEYS = ("wq", "bq", "wkv", "bkv", "wo", "bo", "ln1_g", "ln1_b",
               "w1", "b1", "w2", "b2", "ln2_g", "ln2_b")


# --------------------------------------------------------------------------
# SAKT forward (trans=False, mask_future=False path)
# --------------------------------------------------------------------------
def sakt_forward(params, skills, responses, *, num_skills, length, num_heads, num_blocks):
    q = skills                                                    # (B, L) int32
    r = responses                                                 # (B, L) int32
    masked_r = r * (r > -1).astype(r.dtype)
    qry = q[:, length:]                                           # (B, S)
    q_hist = q[:, :-length]                                       # (B, S)
    masked_r = masked_r[:, :-length]
    S = q_hist.shape[1]

    # base_emb (embedding gathers = glue, kept in plain JAX)
    x_idx = q_hist + num_skills * masked_r
    qshftemb = params["exercise_emb"][qry]                        # (B, S, E)
    xemb = params["interaction_emb"][x_idx] + params["position_emb"][jnp.arange(S)][None]

    flat_w = []
    for blk in params["blocks"]:
        flat_w += [blk[k] for k in _BLOCK_KEYS]
    flat_w += [params["pred_w"], params["pred_b"]]

    # fused: both transformer blocks + sigmoid prediction head in one pallas_call
    p = sakt_fused(qshftemb, xemb, flat_w,
                   num_blocks=num_blocks, num_heads=num_heads)    # (B, S)
    true = r[:, length:].astype(jnp.float32)
    # TODO(synk): BCELoss / training-mode dropout are not part of the forward kernel.
    return {"pred": p, "true": true}


# --------------------------------------------------------------------------
if __name__ == "__main__":
    B = 2            # batch
    L = 9            # raw sequence length (skills / responses)
    LENGTH = 1       # shift
    S = L - LENGTH   # model sequence length (== seq_len for position emb)
    E = 32           # embedding_size
    H = 4            # num_attn_heads
    NUM_SKILLS = 16
    NUM_BLOCKS = 2

    key = jax.random.PRNGKey(0)
    kp, ks, kr = jax.random.split(key, 3)
    params = init_params(kp, NUM_SKILLS, S, E, H, NUM_BLOCKS)

    skills = jax.random.randint(ks, (B, L), 0, NUM_SKILLS, dtype=jnp.int32)
    responses = jax.random.randint(kr, (B, L), -1, 2, dtype=jnp.int32)

    fwd = jax.jit(functools.partial(sakt_forward, num_skills=NUM_SKILLS,
                                    length=LENGTH, num_heads=H, num_blocks=NUM_BLOCKS))
    out = fwd(params, skills, responses)
    jax.block_until_ready(out)

    assert out["pred"].shape == (B, S) and out["true"].shape == (B, S)
    assert bool(jnp.all(jnp.isfinite(out["pred"])))
    assert bool(jnp.all((out["pred"] >= 0.0) & (out["pred"] <= 1.0)))
    print("KERNEL_OK")
</pallas_src>

<mosaic_0001>
module attributes {stable_mosaic.version = 11 : i64} {
  func.func @sakt_fused_kernel(%arg0: i32, %arg1: memref<1x8x32xf32, #tpu.memory_space<vmem>>, %arg2: memref<1x8x32xf32, #tpu.memory_space<vmem>>, %arg3: memref<32x32xf32, #tpu.memory_space<vmem>>, %arg4: memref<1x32xf32, #tpu.memory_space<vmem>>, %arg5: memref<32x64xf32, #tpu.memory_space<vmem>>, %arg6: memref<1x64xf32, #tpu.memory_space<vmem>>, %arg7: memref<32x32xf32, #tpu.memory_space<vmem>>, %arg8: memref<1x32xf32, #tpu.memory_space<vmem>>, %arg9: memref<1x32xf32, #tpu.memory_space<vmem>>, %arg10: memref<1x32xf32, #tpu.memory_space<vmem>>, %arg11: memref<32x32xf32, #tpu.memory_space<vmem>>, %arg12: memref<1x32xf32, #tpu.memory_space<vmem>>, %arg13: memref<32x32xf32, #tpu.memory_space<vmem>>, %arg14: memref<1x32xf32, #tpu.memory_space<vmem>>, %arg15: memref<1x32xf32, #tpu.memory_space<vmem>>, %arg16: memref<1x32xf32, #tpu.memory_space<vmem>>, %arg17: memref<32x32xf32, #tpu.memory_space<vmem>>, %arg18: memref<1x32xf32, #tpu.memory_space<vmem>>, %arg19: memref<32x64xf32, #tpu.memory_space<vmem>>, %arg20: memref<1x64xf32, #tpu.memory_space<vmem>>, %arg21: memref<32x32xf32, #tpu.memory_space<vmem>>, %arg22: memref<1x32xf32, #tpu.memory_space<vmem>>, %arg23: memref<1x32xf32, #tpu.memory_space<vmem>>, %arg24: memref<1x32xf32, #tpu.memory_space<vmem>>, %arg25: memref<32x32xf32, #tpu.memory_space<vmem>>, %arg26: memref<1x32xf32, #tpu.memory_space<vmem>>, %arg27: memref<32x32xf32, #tpu.memory_space<vmem>>, %arg28: memref<1x32xf32, #tpu.memory_space<vmem>>, %arg29: memref<1x32xf32, #tpu.memory_space<vmem>>, %arg30: memref<1x32xf32, #tpu.memory_space<vmem>>, %arg31: memref<1x32xf32, #tpu.memory_space<vmem>>, %arg32: memref<1x1xf32, #tpu.memory_space<vmem>>, %arg33: memref<1x1x8xf32, #tpu.memory_space<vmem>>) attributes {dimension_semantics = [#tpu.dimension_semantics<parallel>], iteration_bounds = array<i64: 2>, scalar_prefetch = 0 : i64, scratch_operands = 0 : i64, tpu.core_type = #tpu.core_type<tc>, window_params = [{transform_indices = @transform_0, window_bounds = array<i64: 1, 8, 32>}, {transform_indices = @transform_1, window_bounds = array<i64: 1, 8, 32>}, {pipeline_mode = #tpu.pipeline_mode<synchronous>, transform_indices = @transform_2, window_bounds = array<i64: 32, 32>}, {pipeline_mode = #tpu.pipeline_mode<synchronous>, transform_indices = @transform_3, window_bounds = array<i64: 1, 32>}, {pipeline_mode = #tpu.pipeline_mode<synchronous>, transform_indices = @transform_4, window_bounds = array<i64: 32, 64>}, {pipeline_mode = #tpu.pipeline_mode<synchronous>, transform_indices = @transform_5, window_bounds = array<i64: 1, 64>}, {pipeline_mode = #tpu.pipeline_mode<synchronous>, transform_indices = @transform_6, window_bounds = array<i64: 32, 32>}, {pipeline_mode = #tpu.pipeline_mode<synchronous>, transform_indices = @transform_7, window_bounds = array<i64: 1, 32>}, {pipeline_mode = #tpu.pipeline_mode<synchronous>, transform_indices = @transform_8, window_bounds = array<i64: 1, 32>}, {pipeline_mode = #tpu.pipeline_mode<synchronous>, transform_indices = @transform_9, window_bounds = array<i64: 1, 32>}, {pipeline_mode = #tpu.pipeline_mode<synchronous>, transform_indices = @transform_10, window_bounds = array<i64: 32, 32>}, {pipeline_mode = #tpu.pipeline_mode<synchronous>, transform_indices = @transform_11, window_bounds = array<i64: 1, 32>}, {pipeline_mode = #tpu.pipeline_mode<synchronous>, transform_indices = @transform_12, window_bounds = array<i64: 32, 32>}, {pipeline_mode = #tpu.pipeline_mode<synchronous>, transform_indices = @transform_13, window_bounds = array<i64: 1, 32>}, {pipeline_mode = #tpu.pipeline_mode<synchronous>, transform_indices = @transform_14, window_bounds = array<i64: 1, 32>}, {pipeline_mode = #tpu.pipeline_mode<synchronous>, transform_indices = @transform_15, window_bounds = array<i64: 1, 32>}, {pipeline_mode = #tpu.pipeline_mode<synchronous>, transform_indices = @transform_16, window_bounds = array<i64: 32, 32>}, {pipeline_mode = #tpu.pipeline_mode<synchronous>, transform_indices = @transform_17, window_bounds = array<i64: 1, 32>}, {pipeline_mode = #tpu.pipeline_mode<synchronous>, transform_indices = @transform_18, window_bounds = array<i64: 32, 64>}, {pipeline_mode = #tpu.pipeline_mode<synchronous>, transform_indices = @transform_19, window_bounds = array<i64: 1, 64>}, {pipeline_mode = #tpu.pipeline_mode<synchronous>, transform_indices = @transform_20, window_bounds = array<i64: 32, 32>}, {pipeline_mode = #tpu.pipeline_mode<synchronous>, transform_indices = @transform_21, window_bounds = array<i64: 1, 32>}, {pipeline_mode = #tpu.pipeline_mode<synchronous>, transform_indices = @transform_22, window_bounds = array<i64: 1, 32>}, {pipeline_mode = #tpu.pipeline_mode<synchronous>, transform_indices = @transform_23, window_bounds = array<i64: 1, 32>}, {pipeline_mode = #tpu.pipeline_mode<synchronous>, transform_indices = @transform_24, window_bounds = array<i64: 32, 32>}, {pipeline_mode = #tpu.pipeline_mode<synchronous>, transform_indices = @transform_25, window_bounds = array<i64: 1, 32>}, {pipeline_mode = #tpu.pipeline_mode<synchronous>, transform_indices = @transform_26, window_bounds = array<i64: 32, 32>}, {pipeline_mode = #tpu.pipeline_mode<synchronous>, transform_indices = @transform_27, window_bounds = array<i64: 1, 32>}, {pipeline_mode = #tpu.pipeline_mode<synchronous>, transform_indices = @transform_28, window_bounds = array<i64: 1, 32>}, {pipeline_mode = #tpu.pipeline_mode<synchronous>, transform_indices = @transform_29, window_bounds = array<i64: 1, 32>}, {pipeline_mode = #tpu.pipeline_mode<synchronous>, transform_indices = @transform_30, window_bounds = array<i64: 1, 32>}, {pipeline_mode = #tpu.pipeline_mode<synchronous>, transform_indices = @transform_31, window_bounds = array<i64: 1, 1>}, {transform_indices = @transform_32, window_bounds = array<i64: 1, 1, 8>}]} {
    %c0 = arith.constant 0 : index
    %c0_0 = arith.constant 0 : index
    %c0_1 = arith.constant 0 : index
    %0 = vector.load %arg1[%c0, %c0_0, %c0_1] : memref<1x8x32xf32, #tpu.memory_space<vmem>>, vector<1x8x32xf32>
    %1 = vector.shape_cast %0 : vector<1x8x32xf32> to vector<8x32xf32>
    %c0_2 = arith.constant 0 : index
    %c0_3 = arith.constant 0 : index
    %c0_4 = arith.constant 0 : index
    %2 = vector.load %arg2[%c0_2, %c0_3, %c0_4] : memref<1x8x32xf32, #tpu.memory_space<vmem>>, vector<1x8x32xf32>
    %3 = vector.shape_cast %2 : vector<1x8x32xf32> to vector<8x32xf32>
    %4 = tpu.iota {dimensions = array<i32: 0>} : vector<8x8xi32>
    %5 = tpu.iota {dimensions = array<i32: 1>} : vector<8x8xi32>
    %6 = arith.cmpi sgt, %5, %4 : vector<8x8xi32>
    %c0_5 = arith.constant 0 : index
    %c0_6 = arith.constant 0 : index
    %7 = vector.load %arg3[%c0_5, %c0_6] : memref<32x32xf32, #tpu.memory_space<vmem>>, vector<32x32xf32>
    %c0_7 = arith.constant 0 : index
    %c0_8 = arith.constant 0 : index
    %8 = vector.load %arg4[%c0_7, %c0_8] : memref<1x32xf32, #tpu.memory_space<vmem>>, vector<1x32xf32>
    %c0_9 = arith.constant 0 : index
    %c0_10 = arith.constant 0 : index
    %9 = vector.load %arg5[%c0_9, %c0_10] : memref<32x64xf32, #tpu.memory_space<vmem>>, vector<32x64xf32>
    %c0_11 = arith.constant 0 : index
    %c0_12 = arith.constant 0 : index
    %10 = vector.load %arg6[%c0_11, %c0_12] : memref<1x64xf32, #tpu.memory_space<vmem>>, vector<1x64xf32>
    %c0_13 = arith.constant 0 : index
    %c0_14 = arith.constant 0 : index
    %11 = vector.load %arg7[%c0_13, %c0_14] : memref<32x32xf32, #tpu.memory_space<vmem>>, vector<32x32xf32>
    %c0_15 = arith.constant 0 : index
    %c0_16 = arith.constant 0 : index
    %12 = vector.load %arg8[%c0_15, %c0_16] : memref<1x32xf32, #tpu.memory_space<vmem>>, vector<1x32xf32>
    %c0_17 = arith.constant 0 : index
    %c0_18 = arith.constant 0 : index
    %13 = vector.load %arg9[%c0_17, %c0_18] : memref<1x32xf32, #tpu.memory_space<vmem>>, vector<1x32xf32>
    %c0_19 = arith.constant 0 : index
    %c0_20 = arith.constant 0 : index
    %14 = vector.load %arg10[%c0_19, %c0_20] : memref<1x32xf32, #tpu.memory_space<vmem>>, vector<1x32xf32>
    %c0_21 = arith.constant 0 : index
    %c0_22 = arith.constant 0 : index
    %15 = vector.load %arg11[%c0_21, %c0_22] : memref<32x32xf32, #tpu.memory_space<vmem>>, vector<32x32xf32>
    %c0_23 = arith.constant 0 : index
    %c0_24 = arith.constant 0 : index
    %16 = vector.load %arg12[%c0_23, %c0_24] : memref<1x32xf32, #tpu.memory_space<vmem>>, vector<1x32xf32>
    %c0_25 = arith.constant 0 : index
    %c0_26 = arith.constant 0 : index
    %17 = vector.load %arg13[%c0_25, %c0_26] : memref<32x32xf32, #tpu.memory_space<vmem>>, vector<32x32xf32>
    %c0_27 = arith.constant 0 : index
    %c0_28 = arith.constant 0 : index
    %18 = vector.load %arg14[%c0_27, %c0_28] : memref<1x32xf32, #tpu.memory_space<vmem>>, vector<1x32xf32>
    %c0_29 = arith.constant 0 : index
    %c0_30 = arith.constant 0 : index
    %19 = vector.load %arg15[%c0_29, %c0_30] : memref<1x32xf32, #tpu.memory_space<vmem>>, vector<1x32xf32>
    %c0_31 = arith.constant 0 : index
    %c0_32 = arith.constant 0 : index
    %20 = vector.load %arg16[%c0_31, %c0_32] : memref<1x32xf32, #tpu.memory_space<vmem>>, vector<1x32xf32>
    %cst = arith.constant dense<0.000000e+00> : vector<8x32xf32>
    %21 = tpu.matmul %1, %7, %cst {dimension_numbers = #tpu.dot_dimension_numbers<[1], [0], [0], [1], [0, 0, 1, 1], [], []>} : vector<8x32xf32>, vector<32x32xf32>, vector<8x32xf32> -> vector<8x32xf32>
    %22 = vector.broadcast %8 : vector<1x32xf32> to vector<8x32xf32>
    %23 = arith.addf %21, %22 : vector<8x32xf32>
    %cst_33 = arith.constant dense<0.000000e+00> : vector<8x64xf32>
    %24 = tpu.matmul %3, %9, %cst_33 {dimension_numbers = #tpu.dot_dimension_numbers<[1], [0], [0], [1], [0, 0, 1, 1], [], []>} : vector<8x32xf32>, vector<32x64xf32>, vector<8x64xf32> -> vector<8x64xf32>
    %25 = vector.broadcast %10 : vector<1x64xf32> to vector<8x64xf32>
    %26 = arith.addf %24, %25 : vector<8x64xf32>
    %cst_34 = arith.constant 0.000000e+00 : f32
    %27 = vector.broadcast %cst_34 : f32 to vector<8x32xf32>
    %28 = vector.extract_strided_slice %23 {offsets = [0, 0], sizes = [8, 8], strides = [1, 1]} : vector<8x32xf32> to vector<8x8xf32>
    %29 = vector.extract_strided_slice %26 {offsets = [0, 0], sizes = [8, 8], strides = [1, 1]} : vector<8x64xf32> to vector<8x8xf32>
    %30 = vector.extract_strided_slice %26 {offsets = [0, 32], sizes = [8, 8], strides = [1, 1]} : vector<8x64xf32> to vector<8x8xf32>
    %31 = tpu.transpose %29, [1, 0] : vector<8x8xf32> -> vector<8x8xf32>
    %cst_35 = arith.constant dense<0.000000e+00> : vector<8x8xf32>
    %32 = tpu.matmul %28, %31, %cst_35 {dimension_numbers = #tpu.dot_dimension_numbers<[1], [0], [0], [1], [0, 0, 1, 1], [], []>} : vector<8x8xf32>, vector<8x8xf32>, vector<8x8xf32> -> vector<8x8xf32>
    %cst_36 = arith.constant -1.000000e+30 : f32
    %33 = vector.broadcast %cst_36 : f32 to vector<8x8xf32>
    %34 = arith.select %6, %33, %32 : vector<8x8xi1>, vector<8x8xf32>
    %cst_37 = arith.constant dense<0xFF800000> : vector<8xf32>
    %35 = vector.multi_reduction <maximumf>, %34, %cst_37 [1] : vector<8x8xf32> to vector<8xf32>
    %36 = vector.shape_cast %35 : vector<8xf32> to vector<8x1xf32>
    %37 = vector.broadcast %36 : vector<8x1xf32> to vector<8x8xf32>
    %38 = arith.subf %34, %37 : vector<8x8xf32>
    %39 = math.exp %38 : vector<8x8xf32>
    %cst_38 = arith.constant dense<0.000000e+00> : vector<8xf32>
    %40 = vector.multi_reduction <add>, %39, %cst_38 [1] : vector<8x8xf32> to vector<8xf32>
    %41 = vector.shape_cast %40 : vector<8xf32> to vector<8x1xf32>
    %42 = tpu.reciprocal %41 {approx = true} : vector<8x1xf32> -> vector<8x1xf32>
    %43 = vector.broadcast %42 : vector<8x1xf32> to vector<8x8xf32>
    %44 = arith.mulf %39, %43 : vector<8x8xf32>
    %cst_39 = arith.constant dense<0.000000e+00> : vector<8x8xf32>
    %45 = tpu.matmul %44, %30, %cst_39 {dimension_numbers = #tpu.dot_dimension_numbers<[1], [0], [0], [1], [0, 0, 1, 1], [], []>} : vector<8x8xf32>, vector<8x8xf32>, vector<8x8xf32> -> vector<8x8xf32>
    %46 = vector.extract_strided_slice %11 {offsets = [0, 0], sizes = [8, 32], strides = [1, 1]} : vector<32x32xf32> to vector<8x32xf32>
    %cst_40 = arith.constant dense<0.000000e+00> : vector<8x32xf32>
    %47 = tpu.matmul %45, %46, %cst_40 {dimension_numbers = #tpu.dot_dimension_numbers<[1], [0], [0], [1], [0, 0, 1, 1], [], []>} : vector<8x8xf32>, vector<8x32xf32>, vector<8x32xf32> -> vector<8x32xf32>
    %48 = arith.addf %27, %47 : vector<8x32xf32>
    %49 = vector.extract_strided_slice %23 {offsets = [0, 8], sizes = [8, 8], strides = [1, 1]} : vector<8x32xf32> to vector<8x8xf32>
    %50 = vector.extract_strided_slice %26 {offsets = [0, 8], sizes = [8, 8], strides = [1, 1]} : vector<8x64xf32> to vector<8x8xf32>
    %51 = vector.extract_strided_slice %26 {offsets = [0, 40], sizes = [8, 8], strides = [1, 1]} : vector<8x64xf32> to vector<8x8xf32>
    %52 = tpu.transpose %50, [1, 0] : vector<8x8xf32> -> vector<8x8xf32>
    %cst_41 = arith.constant dense<0.000000e+00> : vector<8x8xf32>
    %53 = tpu.matmul %49, %52, %cst_41 {dimension_numbers = #tpu.dot_dimension_numbers<[1], [0], [0], [1], [0, 0, 1, 1], [], []>} : vector<8x8xf32>, vector<8x8xf32>, vector<8x8xf32> -> vector<8x8xf32>
    %cst_42 = arith.constant -1.000000e+30 : f32
    %54 = vector.broadcast %cst_42 : f32 to vector<8x8xf32>
    %55 = arith.select %6, %54, %53 : vector<8x8xi1>, vector<8x8xf32>
    %cst_43 = arith.constant dense<0xFF800000> : vector<8xf32>
    %56 = vector.multi_reduction <maximumf>, %55, %cst_43 [1] : vector<8x8xf32> to vector<8xf32>
    %57 = vector.shape_cast %56 : vector<8xf32> to vector<8x1xf32>
    %58 = vector.broadcast %57 : vector<8x1xf32> to vector<8x8xf32>
    %59 = arith.subf %55, %58 : vector<8x8xf32>
    %60 = math.exp %59 : vector<8x8xf32>
    %cst_44 = arith.constant dense<0.000000e+00> : vector<8xf32>
    %61 = vector.multi_reduction <add>, %60, %cst_44 [1] : vector<8x8xf32> to vector<8xf32>
    %62 = vector.shape_cast %61 : vector<8xf32> to vector<8x1xf32>
    %63 = tpu.reciprocal %62 {approx = true} : vector<8x1xf32> -> vector<8x1xf32>
    %64 = vector.broadcast %63 : vector<8x1xf32> to vector<8x8xf32>
    %65 = arith.mulf %60, %64 : vector<8x8xf32>
    %cst_45 = arith.constant dense<0.000000e+00> : vector<8x8xf32>
    %66 = tpu.matmul %65, %51, %cst_45 {dimension_numbers = #tpu.dot_dimension_numbers<[1], [0], [0], [1], [0, 0, 1, 1], [], []>} : vector<8x8xf32>, vector<8x8xf32>, vector<8x8xf32> -> vector<8x8xf32>
    %67 = vector.extract_strided_slice %11 {offsets = [8, 0], sizes = [8, 32], strides = [1, 1]} : vector<32x32xf32> to vector<8x32xf32>
    %cst_46 = arith.constant dense<0.000000e+00> : vector<8x32xf32>
    %68 = tpu.matmul %66, %67, %cst_46 {dimension_numbers = #tpu.dot_dimension_numbers<[1], [0], [0], [1], [0, 0, 1, 1], [], []>} : vector<8x8xf32>, vector<8x32xf32>, vector<8x32xf32> -> vector<8x32xf32>
    %69 = arith.addf %48, %68 : vector<8x32xf32>
    %70 = vector.extract_strided_slice %23 {offsets = [0, 16], sizes = [8, 8], strides = [1, 1]} : vector<8x32xf32> to vector<8x8xf32>
    %71 = vector.extract_strided_slice %26 {offsets = [0, 16], sizes = [8, 8], strides = [1, 1]} : vector<8x64xf32> to vector<8x8xf32>
    %72 = vector.extract_strided_slice %26 {offsets = [0, 48], sizes = [8, 8], strides = [1, 1]} : vector<8x64xf32> to vector<8x8xf32>
    %73 = tpu.transpose %71, [1, 0] : vector<8x8xf32> -> vector<8x8xf32>
    %cst_47 = arith.constant dense<0.000000e+00> : vector<8x8xf32>
    %74 = tpu.matmul %70, %73, %cst_47 {dimension_numbers = #tpu.dot_dimension_numbers<[1], [0], [0], [1], [0, 0, 1, 1], [], []>} : vector<8x8xf32>, vector<8x8xf32>, vector<8x8xf32> -> vector<8x8xf32>
    %cst_48 = arith.constant -1.000000e+30 : f32
    %75 = vector.broadcast %cst_48 : f32 to vector<8x8xf32>
    %76 = arith.select %6, %75, %74 : vector<8x8xi1>, vector<8x8xf32>
    %cst_49 = arith.constant dense<0xFF800000> : vector<8xf32>
    %77 = vector.multi_reduction <maximumf>, %76, %cst_49 [1] : vector<8x8xf32> to vector<8xf32>
    %78 = vector.shape_cast %77 : vector<8xf32> to vector<8x1xf32>
    %79 = vector.broadcast %78 : vector<8x1xf32> to vector<8x8xf32>
    %80 = arith.subf %76, %79 : vector<8x8xf32>
    %81 = math.exp %80 : vector<8x8xf32>
    %cst_50 = arith.constant dense<0.000000e+00> : vector<8xf32>
    %82 = vector.multi_reduction <add>, %81, %cst_50 [1] : vector<8x8xf32> to vector<8xf32>
    %83 = vector.shape_cast %82 : vector<8xf32> to vector<8x1xf32>
    %84 = tpu.reciprocal %83 {approx = true} : vector<8x1xf32> -> vector<8x1xf32>
    %85 = vector.broadcast %84 : vector<8x1xf32> to vector<8x8xf32>
    %86 = arith.mulf %81, %85 : vector<8x8xf32>
    %cst_51 = arith.constant dense<0.000000e+00> : vector<8x8xf32>
    %87 = tpu.matmul %86, %72, %cst_51 {dimension_numbers = #tpu.dot_dimension_numbers<[1], [0], [0], [1], [0, 0, 1, 1], [], []>} : vector<8x8xf32>, vector<8x8xf32>, vector<8x8xf32> -> vector<8x8xf32>
    %88 = vector.extract_strided_slice %11 {offsets = [16, 0], sizes = [8, 32], strides = [1, 1]} : vector<32x32xf32> to vector<8x32xf32>
    %cst_52 = arith.constant dense<0.000000e+00> : vector<8x32xf32>
    %89 = tpu.matmul %87, %88, %cst_52 {dimension_numbers = #tpu.dot_dimension_numbers<[1], [0], [0], [1], [0, 0, 1, 1], [], []>} : vector<8x8xf32>, vector<8x32xf32>, vector<8x32xf32> -> vector<8x32xf32>
    %90 = arith.addf %69, %89 : vector<8x32xf32>
    %91 = vector.extract_strided_slice %23 {offsets = [0, 24], sizes = [8, 8], strides = [1, 1]} : vector<8x32xf32> to vector<8x8xf32>
    %92 = vector.extract_strided_slice %26 {offsets = [0, 24], sizes = [8, 8], strides = [1, 1]} : vector<8x64xf32> to vector<8x8xf32>
    %93 = vector.extract_strided_slice %26 {offsets = [0, 56], sizes = [8, 8], strides = [1, 1]} : vector<8x64xf32> to vector<8x8xf32>
    %94 = tpu.transpose %92, [1, 0] : vector<8x8xf32> -> vector<8x8xf32>
    %cst_53 = arith.constant dense<0.000000e+00> : vector<8x8xf32>
    %95 = tpu.matmul %91, %94, %cst_53 {dimension_numbers = #tpu.dot_dimension_numbers<[1], [0], [0], [1], [0, 0, 1, 1], [], []>} : vector<8x8xf32>, vector<8x8xf32>, vector<8x8xf32> -> vector<8x8xf32>
    %cst_54 = arith.constant -1.000000e+30 : f32
    %96 = vector.broadcast %cst_54 : f32 to vector<8x8xf32>
    %97 = arith.select %6, %96, %95 : vector<8x8xi1>, vector<8x8xf32>
    %cst_55 = arith.constant dense<0xFF800000> : vector<8xf32>
    %98 = vector.multi_reduction <maximumf>, %97, %cst_55 [1] : vector<8x8xf32> to vector<8xf32>
    %99 = vector.shape_cast %98 : vector<8xf32> to vector<8x1xf32>
    %100 = vector.broadcast %99 : vector<8x1xf32> to vector<8x8xf32>
    %101 = arith.subf %97, %100 : vector<8x8xf32>
    %102 = math.exp %101 : vector<8x8xf32>
    %cst_56 = arith.constant dense<0.000000e+00> : vector<8xf32>
    %103 = vector.multi_reduction <add>, %102, %cst_56 [1] : vector<8x8xf32> to vector<8xf32>
    %104 = vector.shape_cast %103 : vector<8xf32> to vector<8x1xf32>
    %105 = tpu.reciprocal %104 {approx = true} : vector<8x1xf32> -> vector<8x1xf32>
    %106 = vector.broadcast %105 : vector<8x1xf32> to vector<8x8xf32>
    %107 = arith.mulf %102, %106 : vector<8x8xf32>
    %cst_57 = arith.constant dense<0.000000e+00> : vector<8x8xf32>
    %108 = tpu.matmul %107, %93, %cst_57 {dimension_numbers = #tpu.dot_dimension_numbers<[1], [0], [0], [1], [0, 0, 1, 1], [], []>} : vector<8x8xf32>, vector<8x8xf32>, vector<8x8xf32> -> vector<8x8xf32>
    %109 = vector.extract_strided_slice %11 {offsets = [24, 0], sizes = [8, 32], strides = [1, 1]} : vector<32x32xf32> to vector<8x32xf32>
    %cst_58 = arith.constant dense<0.000000e+00> : vector<8x32xf32>
    %110 = tpu.matmul %108, %109, %cst_58 {dimension_numbers = #tpu.dot_dimension_numbers<[1], [0], [0], [1], [0, 0, 1, 1], [], []>} : vector<8x8xf32>, vector<8x32xf32>, vector<8x32xf32> -> vector<8x32xf32>
    %111 = arith.addf %90, %110 : vector<8x32xf32>
    %112 = vector.broadcast %12 : vector<1x32xf32> to vector<8x32xf32>
    %113 = arith.addf %111, %112 : vector<8x32xf32>
    %114 = arith.addf %1, %113 : vector<8x32xf32>
    %cst_59 = arith.constant dense<0.000000e+00> : vector<8xf32>
    %115 = vector.multi_reduction <add>, %114, %cst_59 [1] : vector<8x32xf32> to vector<8xf32>
    %116 = vector.shape_cast %115 : vector<8xf32> to vector<8x1xf32>
    %cst_60 = arith.constant 3.200000e+01 : f32
    %117 = vector.broadcast %cst_60 : f32 to vector<8x1xf32>
    %118 = arith.divf %116, %117 : vector<8x1xf32>
    %119 = vector.broadcast %118 : vector<8x1xf32> to vector<8x32xf32>
    %120 = arith.subf %114, %119 : vector<8x32xf32>
    %121 = arith.mulf %120, %120 : vector<8x32xf32>
    %cst_61 = arith.constant dense<0.000000e+00> : vector<8xf32>
    %122 = vector.multi_reduction <add>, %121, %cst_61 [1] : vector<8x32xf32> to vector<8xf32>
    %123 = vector.shape_cast %122 : vector<8xf32> to vector<8x1xf32>
    %cst_62 = arith.constant 3.200000e+01 : f32
    %124 = vector.broadcast %cst_62 : f32 to vector<8x1xf32>
    %125 = arith.divf %123, %124 : vector<8x1xf32>
    %126 = vector.broadcast %118 : vector<8x1xf32> to vector<8x32xf32>
    %127 = arith.subf %114, %126 : vector<8x32xf32>
    %cst_63 = arith.constant 9.99999974E-6 : f32
    %128 = vector.broadcast %cst_63 : f32 to vector<8x1xf32>
    %129 = arith.addf %125, %128 : vector<8x1xf32>
    %130 = math.rsqrt %129 : vector<8x1xf32>
    %131 = vector.broadcast %130 : vector<8x1xf32> to vector<8x32xf32>
    %132 = arith.mulf %127, %131 : vector<8x32xf32>
    %133 = vector.broadcast %13 : vector<1x32xf32> to vector<8x32xf32>
    %134 = arith.mulf %132, %133 : vector<8x32xf32>
    %135 = vector.broadcast %14 : vector<1x32xf32> to vector<8x32xf32>
    %136 = arith.addf %134, %135 : vector<8x32xf32>
    %cst_64 = arith.constant dense<0.000000e+00> : vector<8x32xf32>
    %137 = tpu.matmul %136, %15, %cst_64 {dimension_numbers = #tpu.dot_dimension_numbers<[1], [0], [0], [1], [0, 0, 1, 1], [], []>} : vector<8x32xf32>, vector<32x32xf32>, vector<8x32xf32> -> vector<8x32xf32>
    %138 = vector.broadcast %16 : vector<1x32xf32> to vector<8x32xf32>
    %139 = arith.addf %137, %138 : vector<8x32xf32>
    %cst_65 = arith.constant 0.000000e+00 : f32
    %140 = vector.broadcast %cst_65 : f32 to vector<8x32xf32>
    %141 = arith.maximumf %139, %140 : vector<8x32xf32>
    %cst_66 = arith.constant dense<0.000000e+00> : vector<8x32xf32>
    %142 = tpu.matmul %141, %17, %cst_66 {dimension_numbers = #tpu.dot_dimension_numbers<[1], [0], [0], [1], [0, 0, 1, 1], [], []>} : vector<8x32xf32>, vector<32x32xf32>, vector<8x32xf32> -> vector<8x32xf32>
    %143 = vector.broadcast %18 : vector<1x32xf32> to vector<8x32xf32>
    %144 = arith.addf %142, %143 : vector<8x32xf32>
    %145 = arith.addf %136, %144 : vector<8x32xf32>
    %cst_67 = arith.constant dense<0.000000e+00> : vector<8xf32>
    %146 = vector.multi_reduction <add>, %145, %cst_67 [1] : vector<8x32xf32> to vector<8xf32>
    %147 = vector.shape_cast %146 : vector<8xf32> to vector<8x1xf32>
    %cst_68 = arith.constant 3.200000e+01 : f32
    %148 = vector.broadcast %cst_68 : f32 to vector<8x1xf32>
    %149 = arith.divf %147, %148 : vector<8x1xf32>
    %150 = vector.broadcast %149 : vector<8x1xf32> to vector<8x32xf32>
    %151 = arith.subf %145, %150 : vector<8x32xf32>
    %152 = arith.mulf %151, %151 : vector<8x32xf32>
    %cst_69 = arith.constant dense<0.000000e+00> : vector<8xf32>
    %153 = vector.multi_reduction <add>, %152, %cst_69 [1] : vector<8x32xf32> to vector<8xf32>
    %154 = vector.shape_cast %153 : vector<8xf32> to vector<8x1xf32>
    %cst_70 = arith.constant 3.200000e+01 : f32
    %155 = vector.broadcast %cst_70 : f32 to vector<8x1xf32>
    %156 = arith.divf %154, %155 : vector<8x1xf32>
    %157 = vector.broadcast %149 : vector<8x1xf32> to vector<8x32xf32>
    %158 = arith.subf %145, %157 : vector<8x32xf32>
    %cst_71 = arith.constant 9.99999974E-6 : f32
    %159 = vector.broadcast %cst_71 : f32 to vector<8x1xf32>
    %160 = arith.addf %156, %159 : vector<8x1xf32>
    %161 = math.rsqrt %160 : vector<8x1xf32>
    %162 = vector.broadcast %161 : vector<8x1xf32> to vector<8x32xf32>
    %163 = arith.mulf %158, %162 : vector<8x32xf32>
    %164 = vector.broadcast %19 : vector<1x32xf32> to vector<8x32xf32>
    %165 = arith.mulf %163, %164 : vector<8x32xf32>
    %166 = vector.broadcast %20 : vector<1x32xf32> to vector<8x32xf32>
    %167 = arith.addf %165, %166 : vector<8x32xf32>
    %c0_72 = arith.constant 0 : index
    %c0_73 = arith.constant 0 : index
    %168 = vector.load %arg17[%c0_72, %c0_73] : memref<32x32xf32, #tpu.memory_space<vmem>>, vector<32x32xf32>
    %c0_74 = arith.constant 0 : index
    %c0_75 = arith.constant 0 : index
    %169 = vector.load %arg18[%c0_74, %c0_75] : memref<1x32xf32, #tpu.memory_space<vmem>>, vector<1x32xf32>
    %c0_76 = arith.constant 0 : index
    %c0_77 = arith.constant 0 : index
    %170 = vector.load %arg19[%c0_76, %c0_77] : memref<32x64xf32, #tpu.memory_space<vmem>>, vector<32x64xf32>
    %c0_78 = arith.constant 0 : index
    %c0_79 = arith.constant 0 : index
    %171 = vector.load %arg20[%c0_78, %c0_79] : memref<1x64xf32, #tpu.memory_space<vmem>>, vector<1x64xf32>
    %c0_80 = arith.constant 0 : index
    %c0_81 = arith.constant 0 : index
    %172 = vector.load %arg21[%c0_80, %c0_81] : memref<32x32xf32, #tpu.memory_space<vmem>>, vector<32x32xf32>
    %c0_82 = arith.constant 0 : index
    %c0_83 = arith.constant 0 : index
    %173 = vector.load %arg22[%c0_82, %c0_83] : memref<1x32xf32, #tpu.memory_space<vmem>>, vector<1x32xf32>
    %c0_84 = arith.constant 0 : index
    %c0_85 = arith.constant 0 : index
    %174 = vector.load %arg23[%c0_84, %c0_85] : memref<1x32xf32, #tpu.memory_space<vmem>>, vector<1x32xf32>
    %c0_86 = arith.constant 0 : index
    %c0_87 = arith.constant 0 : index
    %175 = vector.load %arg24[%c0_86, %c0_87] : memref<1x32xf32, #tpu.memory_space<vmem>>, vector<1x32xf32>
    %c0_88 = arith.constant 0 : index
    %c0_89 = arith.constant 0 : index
    %176 = vector.load %arg25[%c0_88, %c0_89] : memref<32x32xf32, #tpu.memory_space<vmem>>, vector<32x32xf32>
    %c0_90 = arith.constant 0 : index
    %c0_91 = arith.constant 0 : index
    %177 = vector.load %arg26[%c0_90, %c0_91] : memref<1x32xf32, #tpu.memory_space<vmem>>, vector<1x32xf32>
    %c0_92 = arith.constant 0 : index
    %c0_93 = arith.constant 0 : index
    %178 = vector.load %arg27[%c0_92, %c0_93] : memref<32x32xf32, #tpu.memory_space<vmem>>, vector<32x32xf32>
    %c0_94 = arith.constant 0 : index
    %c0_95 = arith.constant 0 : index
    %179 = vector.load %arg28[%c0_94, %c0_95] : memref<1x32xf32, #tpu.memory_space<vmem>>, vector<1x32xf32>
    %c0_96 = arith.constant 0 : index
    %c0_97 = arith.constant 0 : index
    %180 = vector.load %arg29[%c0_96, %c0_97] : memref<1x32xf32, #tpu.memory_space<vmem>>, vector<1x32xf32>
    %c0_98 = arith.constant 0 : index
    %c0_99 = arith.constant 0 : index
    %181 = vector.load %arg30[%c0_98, %c0_99] : memref<1x32xf32, #tpu.memory_space<vmem>>, vector<1x32xf32>
    %cst_100 = arith.constant dense<0.000000e+00> : vector<8x32xf32>
    %182 = tpu.matmul %1, %168, %cst_100 {dimension_numbers = #tpu.dot_dimension_numbers<[1], [0], [0], [1], [0, 0, 1, 1], [], []>} : vector<8x32xf32>, vector<32x32xf32>, vector<8x32xf32> -> vector<8x32xf32>
    %183 = vector.broadcast %169 : vector<1x32xf32> to vector<8x32xf32>
    %184 = arith.addf %182, %183 : vector<8x32xf32>
    %cst_101 = arith.constant dense<0.000000e+00> : vector<8x64xf32>
    %185 = tpu.matmul %167, %170, %cst_101 {dimension_numbers = #tpu.dot_dimension_numbers<[1], [0], [0], [1], [0, 0, 1, 1], [], []>} : vector<8x32xf32>, vector<32x64xf32>, vector<8x64xf32> -> vector<8x64xf32>
    %186 = vector.broadcast %171 : vector<1x64xf32> to vector<8x64xf32>
    %187 = arith.addf %185, %186 : vector<8x64xf32>
    %cst_102 = arith.constant 0.000000e+00 : f32
    %188 = vector.broadcast %cst_102 : f32 to vector<8x32xf32>
    %189 = vector.extract_strided_slice %184 {offsets = [0, 0], sizes = [8, 8], strides = [1, 1]} : vector<8x32xf32> to vector<8x8xf32>
    %190 = vector.extract_strided_slice %187 {offsets = [0, 0], sizes = [8, 8], strides = [1, 1]} : vector<8x64xf32> to vector<8x8xf32>
    %191 = vector.extract_strided_slice %187 {offsets = [0, 32], sizes = [8, 8], strides = [1, 1]} : vector<8x64xf32> to vector<8x8xf32>
    %192 = tpu.transpose %190, [1, 0] : vector<8x8xf32> -> vector<8x8xf32>
    %cst_103 = arith.constant dense<0.000000e+00> : vector<8x8xf32>
    %193 = tpu.matmul %189, %192, %cst_103 {dimension_numbers = #tpu.dot_dimension_numbers<[1], [0], [0], [1], [0, 0, 1, 1], [], []>} : vector<8x8xf32>, vector<8x8xf32>, vector<8x8xf32> -> vector<8x8xf32>
    %cst_104 = arith.constant -1.000000e+30 : f32
    %194 = vector.broadcast %cst_104 : f32 to vector<8x8xf32>
    %195 = arith.select %6, %194, %193 : vector<8x8xi1>, vector<8x8xf32>
    %cst_105 = arith.constant dense<0xFF800000> : vector<8xf32>
    %196 = vector.multi_reduction <maximumf>, %195, %cst_105 [1] : vector<8x8xf32> to vector<8xf32>
    %197 = vector.shape_cast %196 : vector<8xf32> to vector<8x1xf32>
    %198 = vector.broadcast %197 : vector<8x1xf32> to vector<8x8xf32>
    %199 = arith.subf %195, %198 : vector<8x8xf32>
    %200 = math.exp %199 : vector<8x8xf32>
    %cst_106 = arith.constant dense<0.000000e+00> : vector<8xf32>
    %201 = vector.multi_reduction <add>, %200, %cst_106 [1] : vector<8x8xf32> to vector<8xf32>
    %202 = vector.shape_cast %201 : vector<8xf32> to vector<8x1xf32>
    %203 = tpu.reciprocal %202 {approx = true} : vector<8x1xf32> -> vector<8x1xf32>
    %204 = vector.broadcast %203 : vector<8x1xf32> to vector<8x8xf32>
    %205 = arith.mulf %200, %204 : vector<8x8xf32>
    %cst_107 = arith.constant dense<0.000000e+00> : vector<8x8xf32>
    %206 = tpu.matmul %205, %191, %cst_107 {dimension_numbers = #tpu.dot_dimension_numbers<[1], [0], [0], [1], [0, 0, 1, 1], [], []>} : vector<8x8xf32>, vector<8x8xf32>, vector<8x8xf32> -> vector<8x8xf32>
    %207 = vector.extract_strided_slice %172 {offsets = [0, 0], sizes = [8, 32], strides = [1, 1]} : vector<32x32xf32> to vector<8x32xf32>
    %cst_108 = arith.constant dense<0.000000e+00> : vector<8x32xf32>
    %208 = tpu.matmul %206, %207, %cst_108 {dimension_numbers = #tpu.dot_dimension_numbers<[1], [0], [0], [1], [0, 0, 1, 1], [], []>} : vector<8x8xf32>, vector<8x32xf32>, vector<8x32xf32> -> vector<8x32xf32>
    %209 = arith.addf %188, %208 : vector<8x32xf32>
    %210 = vector.extract_strided_slice %184 {offsets = [0, 8], sizes = [8, 8], strides = [1, 1]} : vector<8x32xf32> to vector<8x8xf32>
    %211 = vector.extract_strided_slice %187 {offsets = [0, 8], sizes = [8, 8], strides = [1, 1]} : vector<8x64xf32> to vector<8x8xf32>
    %212 = vector.extract_strided_slice %187 {offsets = [0, 40], sizes = [8, 8], strides = [1, 1]} : vector<8x64xf32> to vector<8x8xf32>
    %213 = tpu.transpose %211, [1, 0] : vector<8x8xf32> -> vector<8x8xf32>
    %cst_109 = arith.constant dense<0.000000e+00> : vector<8x8xf32>
    %214 = tpu.matmul %210, %213, %cst_109 {dimension_numbers = #tpu.dot_dimension_numbers<[1], [0], [0], [1], [0, 0, 1, 1], [], []>} : vector<8x8xf32>, vector<8x8xf32>, vector<8x8xf32> -> vector<8x8xf32>
    %cst_110 = arith.constant -1.000000e+30 : f32
    %215 = vector.broadcast %cst_110 : f32 to vector<8x8xf32>
    %216 = arith.select %6, %215, %214 : vector<8x8xi1>, vector<8x8xf32>
    %cst_111 = arith.constant dense<0xFF800000> : vector<8xf32>
    %217 = vector.multi_reduction <maximumf>, %216, %cst_111 [1] : vector<8x8xf32> to vector<8xf32>
    %218 = vector.shape_cast %217 : vector<8xf32> to vector<8x1xf32>
    %219 = vector.broadcast %218 : vector<8x1xf32> to vector<8x8xf32>
    %220 = arith.subf %216, %219 : vector<8x8xf32>
    %221 = math.exp %220 : vector<8x8xf32>
    %cst_112 = arith.constant dense<0.000000e+00> : vector<8xf32>
    %222 = vector.multi_reduction <add>, %221, %cst_112 [1] : vector<8x8xf32> to vector<8xf32>
    %223 = vector.shape_cast %222 : vector<8xf32> to vector<8x1xf32>
    %224 = tpu.reciprocal %223 {approx = true} : vector<8x1xf32> -> vector<8x1xf32>
    %225 = vector.broadcast %224 : vector<8x1xf32> to vector<8x8xf32>
    %226 = arith.mulf %221, %225 : vector<8x8xf32>
    %cst_113 = arith.constant dense<0.000000e+00> : vector<8x8xf32>
    %227 = tpu.matmul %226, %212, %cst_113 {dimension_numbers = #tpu.dot_dimension_numbers<[1], [0], [0], [1], [0, 0, 1, 1], [], []>} : vector<8x8xf32>, vector<8x8xf32>, vector<8x8xf32> -> vector<8x8xf32>
    %228 = vector.extract_strided_slice %172 {offsets = [8, 0], sizes = [8, 32], strides = [1, 1]} : vector<32x32xf32> to vector<8x32xf32>
    %cst_114 = arith.constant dense<0.000000e+00> : vector<8x32xf32>
    %229 = tpu.matmul %227, %228, %cst_114 {dimension_numbers = #tpu.dot_dimension_numbers<[1], [0], [0], [1], [0, 0, 1, 1], [], []>} : vector<8x8xf32>, vector<8x32xf32>, vector<8x32xf32> -> vector<8x32xf32>
    %230 = arith.addf %209, %229 : vector<8x32xf32>
    %231 = vector.extract_strided_slice %184 {offsets = [0, 16], sizes = [8, 8], strides = [1, 1]} : vector<8x32xf32> to vector<8x8xf32>
    %232 = vector.extract_strided_slice %187 {offsets = [0, 16], sizes = [8, 8], strides = [1, 1]} : vector<8x64xf32> to vector<8x8xf32>
    %233 = vector.extract_strided_slice %187 {offsets = [0, 48], sizes = [8, 8], strides = [1, 1]} : vector<8x64xf32> to vector<8x8xf32>
    %234 = tpu.transpose %232, [1, 0] : vector<8x8xf32> -> vector<8x8xf32>
    %cst_115 = arith.constant dense<0.000000e+00> : vector<8x8xf32>
    %235 = tpu.matmul %231, %234, %cst_115 {dimension_numbers = #tpu.dot_dimension_numbers<[1], [0], [0], [1], [0, 0, 1, 1], [], []>} : vector<8x8xf32>, vector<8x8xf32>, vector<8x8xf32> -> vector<8x8xf32>
    %cst_116 = arith.constant -1.000000e+30 : f32
    %236 = vector.broadcast %cst_116 : f32 to vector<8x8xf32>
    %237 = arith.select %6, %236, %235 : vector<8x8xi1>, vector<8x8xf32>
    %cst_117 = arith.constant dense<0xFF800000> : vector<8xf32>
    %238 = vector.multi_reduction <maximumf>, %237, %cst_117 [1] : vector<8x8xf32> to vector<8xf32>
    %239 = vector.shape_cast %238 : vector<8xf32> to vector<8x1xf32>
    %240 = vector.broadcast %239 : vector<8x1xf32> to vector<8x8xf32>
    %241 = arith.subf %237, %240 : vector<8x8xf32>
    %242 = math.exp %241 : vector<8x8xf32>
    %cst_118 = arith.constant dense<0.000000e+00> : vector<8xf32>
    %243 = vector.multi_reduction <add>, %242, %cst_118 [1] : vector<8x8xf32> to vector<8xf32>
    %244 = vector.shape_cast %243 : vector<8xf32> to vector<8x1xf32>
    %245 = tpu.reciprocal %244 {approx = true} : vector<8x1xf32> -> vector<8x1xf32>
    %246 = vector.broadcast %245 : vector<8x1xf32> to vector<8x8xf32>
    %247 = arith.mulf %242, %246 : vector<8x8xf32>
    %cst_119 = arith.constant dense<0.000000e+00> : vector<8x8xf32>
    %248 = tpu.matmul %247, %233, %cst_119 {dimension_numbers = #tpu.dot_dimension_numbers<[1], [0], [0], [1], [0, 0, 1, 1], [], []>} : vector<8x8xf32>, vector<8x8xf32>, vector<8x8xf32> -> vector<8x8xf32>
    %249 = vector.extract_strided_slice %172 {offsets = [16, 0], sizes = [8, 32], strides = [1, 1]} : vector<32x32xf32> to vector<8x32xf32>
    %cst_120 = arith.constant dense<0.000000e+00> : vector<8x32xf32>
    %250 = tpu.matmul %248, %249, %cst_120 {dimension_numbers = #tpu.dot_dimension_numbers<[1], [0], [0], [1], [0, 0, 1, 1], [], []>} : vector<8x8xf32>, vector<8x32xf32>, vector<8x32xf32> -> vector<8x32xf32>
    %251 = arith.addf %230, %250 : vector<8x32xf32>
    %252 = vector.extract_strided_slice %184 {offsets = [0, 24], sizes = [8, 8], strides = [1, 1]} : vector<8x32xf32> to vector<8x8xf32>
    %253 = vector.extract_strided_slice %187 {offsets = [0, 24], sizes = [8, 8], strides = [1, 1]} : vector<8x64xf32> to vector<8x8xf32>
    %254 = vector.extract_strided_slice %187 {offsets = [0, 56], sizes = [8, 8], strides = [1, 1]} : vector<8x64xf32> to vector<8x8xf32>
    %255 = tpu.transpose %253, [1, 0] : vector<8x8xf32> -> vector<8x8xf32>
    %cst_121 = arith.constant dense<0.000000e+00> : vector<8x8xf32>
    %256 = tpu.matmul %252, %255, %cst_121 {dimension_numbers = #tpu.dot_dimension_numbers<[1], [0], [0], [1], [0, 0, 1, 1], [], []>} : vector<8x8xf32>, vector<8x8xf32>, vector<8x8xf32> -> vector<8x8xf32>
    %cst_122 = arith.constant -1.000000e+30 : f32
    %257 = vector.broadcast %cst_122 : f32 to vector<8x8xf32>
    %258 = arith.select %6, %257, %256 : vector<8x8xi1>, vector<8x8xf32>
    %cst_123 = arith.constant dense<0xFF800000> : vector<8xf32>
    %259 = vector.multi_reduction <maximumf>, %258, %cst_123 [1] : vector<8x8xf32> to vector<8xf32>
    %260 = vector.shape_cast %259 : vector<8xf32> to vector<8x1xf32>
    %261 = vector.broadcast %260 : vector<8x1xf32> to vector<8x8xf32>
    %262 = arith.subf %258, %261 : vector<8x8xf32>
    %263 = math.exp %262 : vector<8x8xf32>
    %cst_124 = arith.constant dense<0.000000e+00> : vector<8xf32>
    %264 = vector.multi_reduction <add>, %263, %cst_124 [1] : vector<8x8xf32> to vector<8xf32>
    %265 = vector.shape_cast %264 : vector<8xf32> to vector<8x1xf32>
    %266 = tpu.reciprocal %265 {approx = true} : vector<8x1xf32> -> vector<8x1xf32>
    %267 = vector.broadcast %266 : vector<8x1xf32> to vector<8x8xf32>
    %268 = arith.mulf %263, %267 : vector<8x8xf32>
    %cst_125 = arith.constant dense<0.000000e+00> : vector<8x8xf32>
    %269 = tpu.matmul %268, %254, %cst_125 {dimension_numbers = #tpu.dot_dimension_numbers<[1], [0], [0], [1], [0, 0, 1, 1], [], []>} : vector<8x8xf32>, vector<8x8xf32>, vector<8x8xf32> -> vector<8x8xf32>
    %270 = vector.extract_strided_slice %172 {offsets = [24, 0], sizes = [8, 32], strides = [1, 1]} : vector<32x32xf32> to vector<8x32xf32>
    %cst_126 = arith.constant dense<0.000000e+00> : vector<8x32xf32>
    %271 = tpu.matmul %269, %270, %cst_126 {dimension_numbers = #tpu.dot_dimension_numbers<[1], [0], [0], [1], [0, 0, 1, 1], [], []>} : vector<8x8xf32>, vector<8x32xf32>, vector<8x32xf32> -> vector<8x32xf32>
    %272 = arith.addf %251, %271 : vector<8x32xf32>
    %273 = vector.broadcast %173 : vector<1x32xf32> to vector<8x32xf32>
    %274 = arith.addf %272, %273 : vector<8x32xf32>
    %275 = arith.addf %1, %274 : vector<8x32xf32>
    %cst_127 = arith.constant dense<0.000000e+00> : vector<8xf32>
    %276 = vector.multi_reduction <add>, %275, %cst_127 [1] : vector<8x32xf32> to vector<8xf32>
    %277 = vector.shape_cast %276 : vector<8xf32> to vector<8x1xf32>
    %cst_128 = arith.constant 3.200000e+01 : f32
    %278 = vector.broadcast %cst_128 : f32 to vector<8x1xf32>
    %279 = arith.divf %277, %278 : vector<8x1xf32>
    %280 = vector.broadcast %279 : vector<8x1xf32> to vector<8x32xf32>
    %281 = arith.subf %275, %280 : vector<8x32xf32>
    %282 = arith.mulf %281, %281 : vector<8x32xf32>
    %cst_129 = arith.constant dense<0.000000e+00> : vector<8xf32>
    %283 = vector.multi_reduction <add>, %282, %cst_129 [1] : vector<8x32xf32> to vector<8xf32>
    %284 = vector.shape_cast %283 : vector<8xf32> to vector<8x1xf32>
    %cst_130 = arith.constant 3.200000e+01 : f32
    %285 = vector.broadcast %cst_130 : f32 to vector<8x1xf32>
    %286 = arith.divf %284, %285 : vector<8x1xf32>
    %287 = vector.broadcast %279 : vector<8x1xf32> to vector<8x32xf32>
    %288 = arith.subf %275, %287 : vector<8x32xf32>
    %cst_131 = arith.constant 9.99999974E-6 : f32
    %289 = vector.broadcast %cst_131 : f32 to vector<8x1xf32>
    %290 = arith.addf %286, %289 : vector<8x1xf32>
    %291 = math.rsqrt %290 : vector<8x1xf32>
    %292 = vector.broadcast %291 : vector<8x1xf32> to vector<8x32xf32>
    %293 = arith.mulf %288, %292 : vector<8x32xf32>
    %294 = vector.broadcast %174 : vector<1x32xf32> to vector<8x32xf32>
    %295 = arith.mulf %293, %294 : vector<8x32xf32>
    %296 = vector.broadcast %175 : vector<1x32xf32> to vector<8x32xf32>
    %297 = arith.addf %295, %296 : vector<8x32xf32>
    %cst_132 = arith.constant dense<0.000000e+00> : vector<8x32xf32>
    %298 = tpu.matmul %297, %176, %cst_132 {dimension_numbers = #tpu.dot_dimension_numbers<[1], [0], [0], [1], [0, 0, 1, 1], [], []>} : vector<8x32xf32>, vector<32x32xf32>, vector<8x32xf32> -> vector<8x32xf32>
    %299 = vector.broadcast %177 : vector<1x32xf32> to vector<8x32xf32>
    %300 = arith.addf %298, %299 : vector<8x32xf32>
    %cst_133 = arith.constant 0.000000e+00 : f32
    %301 = vector.broadcast %cst_133 : f32 to vector<8x32xf32>
    %302 = arith.maximumf %300, %301 : vector<8x32xf32>
    %cst_134 = arith.constant dense<0.000000e+00> : vector<8x32xf32>
    %303 = tpu.matmul %302, %178, %cst_134 {dimension_numbers = #tpu.dot_dimension_numbers<[1], [0], [0], [1], [0, 0, 1, 1], [], []>} : vector<8x32xf32>, vector<32x32xf32>, vector<8x32xf32> -> vector<8x32xf32>
    %304 = vector.broadcast %179 : vector<1x32xf32> to vector<8x32xf32>
    %305 = arith.addf %303, %304 : vector<8x32xf32>
    %306 = arith.addf %297, %305 : vector<8x32xf32>
    %cst_135 = arith.constant dense<0.000000e+00> : vector<8xf32>
    %307 = vector.multi_reduction <add>, %306, %cst_135 [1] : vector<8x32xf32> to vector<8xf32>
    %308 = vector.shape_cast %307 : vector<8xf32> to vector<8x1xf32>
    %cst_136 = arith.constant 3.200000e+01 : f32
    %309 = vector.broadcast %cst_136 : f32 to vector<8x1xf32>
    %310 = arith.divf %308, %309 : vector<8x1xf32>
    %311 = vector.broadcast %310 : vector<8x1xf32> to vector<8x32xf32>
    %312 = arith.subf %306, %311 : vector<8x32xf32>
    %313 = arith.mulf %312, %312 : vector<8x32xf32>
    %cst_137 = arith.constant dense<0.000000e+00> : vector<8xf32>
    %314 = vector.multi_reduction <add>, %313, %cst_137 [1] : vector<8x32xf32> to vector<8xf32>
    %315 = vector.shape_cast %314 : vector<8xf32> to vector<8x1xf32>
    %cst_138 = arith.constant 3.200000e+01 : f32
    %316 = vector.broadcast %cst_138 : f32 to vector<8x1xf32>
    %317 = arith.divf %315, %316 : vector<8x1xf32>
    %318 = vector.broadcast %310 : vector<8x1xf32> to vector<8x32xf32>
    %319 = arith.subf %306, %318 : vector<8x32xf32>
    %cst_139 = arith.constant 9.99999974E-6 : f32
    %320 = vector.broadcast %cst_139 : f32 to vector<8x1xf32>
    %321 = arith.addf %317, %320 : vector<8x1xf32>
    %322 = math.rsqrt %321 : vector<8x1xf32>
    %323 = vector.broadcast %322 : vector<8x1xf32> to vector<8x32xf32>
    %324 = arith.mulf %319, %323 : vector<8x32xf32>
    %325 = vector.broadcast %180 : vector<1x32xf32> to vector<8x32xf32>
    %326 = arith.mulf %324, %325 : vector<8x32xf32>
    %327 = vector.broadcast %181 : vector<1x32xf32> to vector<8x32xf32>
    %328 = arith.addf %326, %327 : vector<8x32xf32>
    %c0_140 = arith.constant 0 : index
    %c0_141 = arith.constant 0 : index
    %329 = vector.load %arg31[%c0_140, %c0_141] : memref<1x32xf32, #tpu.memory_space<vmem>>, vector<1x32xf32>
    %c0_142 = arith.constant 0 : index
    %c0_143 = arith.constant 0 : index
    %330 = vector.load %arg32[%c0_142, %c0_143] : memref<1x1xf32, #tpu.memory_space<vmem>>, vector<1x1xf32>
    %cst_144 = arith.constant dense<0.000000e+00> : vector<1x8xf32>
    %331 = tpu.matmul %329, %328, %cst_144 {dimension_numbers = #tpu.dot_dimension_numbers<[1], [1], [0], [0], [0, 0, 1, 0], [], []>} : vector<1x32xf32>, vector<8x32xf32>, vector<1x8xf32> -> vector<1x8xf32>
    %332 = vector.broadcast %330 : vector<1x1xf32> to vector<1x8xf32>
    %333 = arith.addf %331, %332 : vector<1x8xf32>
    %334 = arith.negf %333 : vector<1x8xf32>
    %335 = math.exp %334 : vector<1x8xf32>
    %cst_145 = arith.constant 1.000000e+00 : f32
    %336 = vector.broadcast %cst_145 : f32 to vector<1x8xf32>
    %337 = arith.addf %336, %335 : vector<1x8xf32>
    %338 = arith.divf %336, %337 : vector<1x8xf32>
    %339 = vector.shape_cast %338 : vector<1x8xf32> to vector<1x1x8xf32>
    %c0_146 = arith.constant 0 : index
    %c0_147 = arith.constant 0 : index
    %c0_148 = arith.constant 0 : index
    %340 = vector.load %arg33[%c0_146, %c0_147, %c0_148] : memref<1x1x8xf32, #tpu.memory_space<vmem>>, vector<1x1x8xf32>
    tpu.vector_store %arg33[%c0_146, %c0_147, %c0_148], %339 {strides = array<i32>} : memref<1x1x8xf32, #tpu.memory_space<vmem>>, vector<1x1x8xf32>,
    return
  }
  func.func @transform_0(%arg0: i32) -> (i32, i32, i32) {
    %c0_i32 = arith.constant 0 : i32
    %c0_i32_0 = arith.constant 0 : i32
    %c0_i32_1 = arith.constant 0 : i32
    return %arg0, %c0_i32, %c0_i32_0 : i32, i32, i32
  }
  func.func @transform_1(%arg0: i32) -> (i32, i32, i32) {
    %c0_i32 = arith.constant 0 : i32
    %c0_i32_0 = arith.constant 0 : i32
    %c0_i32_1 = arith.constant 0 : i32
    return %arg0, %c0_i32, %c0_i32_0 : i32, i32, i32
  }
  func.func @transform_2(%arg0: i32) -> (i32, i32) {
    %c0_i32 = arith.constant 0 : i32
    %c0_i32_0 = arith.constant 0 : i32
    %c0_i32_1 = arith.constant 0 : i32
    return %c0_i32, %c0_i32_0 : i32, i32
  }
  func.func @transform_3(%arg0: i32) -> (i32, i32) {
    %c0_i32 = arith.constant 0 : i32
    %c0_i32_0 = arith.constant 0 : i32
    %c0_i32_1 = arith.constant 0 : i32
    return %c0_i32, %c0_i32_0 : i32, i32
  }
  func.func @transform_4(%arg0: i32) -> (i32, i32) {
    %c0_i32 = arith.constant 0 : i32
    %c0_i32_0 = arith.constant 0 : i32
    %c0_i32_1 = arith.constant 0 : i32
    return %c0_i32, %c0_i32_0 : i32, i32
  }
  func.func @transform_5(%arg0: i32) -> (i32, i32) {
    %c0_i32 = arith.constant 0 : i32
    %c0_i32_0 = arith.constant 0 : i32
    %c0_i32_1 = arith.constant 0 : i32
    return %c0_i32, %c0_i32_0 : i32, i32
  }
  func.func @transform_6(%arg0: i32) -> (i32, i32) {
    %c0_i32 = arith.constant 0 : i32
    %c0_i32_0 = arith.constant 0 : i32
    %c0_i32_1 = arith.constant 0 : i32
    return %c0_i32, %c0_i32_0 : i32, i32
  }
  func.func @transform_7(%arg0: i32) -> (i32, i32) {
    %c0_i32 = arith.constant 0 : i32
    %c0_i32_0 = arith.constant 0 : i32
    %c0_i32_1 = arith.constant 0 : i32
    return %c0_i32, %c0_i32_0 : i32, i32
  }
  func.func @transform_8(%arg0: i32) -> (i32, i32) {
    %c0_i32 = arith.constant 0 : i32
    %c0_i32_0 = arith.constant 0 : i32
    %c0_i32_1 = arith.constant 0 : i32
    return %c0_i32, %c0_i32_0 : i32, i32
  }
  func.func @transform_9(%arg0: i32) -> (i32, i32) {
    %c0_i32 = arith.constant 0 : i32
    %c0_i32_0 = arith.constant 0 : i32
    %c0_i32_1 = arith.constant 0 : i32
    return %c0_i32, %c0_i32_0 : i32, i32
  }
  func.func @transform_10(%arg0: i32) -> (i32, i32) {
    %c0_i32 = arith.constant 0 : i32
    %c0_i32_0 = arith.constant 0 : i32
    %c0_i32_1 = arith.constant 0 : i32
    return %c0_i32, %c0_i32_0 : i32, i32
  }
  func.func @transform_11(%arg0: i32) -> (i32, i32) {
    %c0_i32 = arith.constant 0 : i32
    %c0_i32_0 = arith.constant 0 : i32
    %c0_i32_1 = arith.constant 0 : i32
    return %c0_i32, %c0_i32_0 : i32, i32
  }
  func.func @transform_12(%arg0: i32) -> (i32, i32) {
    %c0_i32 = arith.constant 0 : i32
    %c0_i32_0 = arith.constant 0 : i32
    %c0_i32_1 = arith.constant 0 : i32
    return %c0_i32, %c0_i32_0 : i32, i32
  }
  func.func @transform_13(%arg0: i32) -> (i32, i32) {
    %c0_i32 = arith.constant 0 : i32
    %c0_i32_0 = arith.constant 0 : i32
    %c0_i32_1 = arith.constant 0 : i32
    return %c0_i32, %c0_i32_0 : i32, i32
  }
  func.func @transform_14(%arg0: i32) -> (i32, i32) {
    %c0_i32 = arith.constant 0 : i32
    %c0_i32_0 = arith.constant 0 : i32
    %c0_i32_1 = arith.constant 0 : i32
    return %c0_i32, %c0_i32_0 : i32, i32
  }
  func.func @transform_15(%arg0: i32) -> (i32, i32) {
    %c0_i32 = arith.constant 0 : i32
    %c0_i32_0 = arith.constant 0 : i32
    %c0_i32_1 = arith.constant 0 : i32
    return %c0_i32, %c0_i32_0 : i32, i32
  }
  func.func @transform_16(%arg0: i32) -> (i32, i32) {
    %c0_i32 = arith.constant 0 : i32
    %c0_i32_0 = arith.constant 0 : i32
    %c0_i32_1 = arith.constant 0 : i32
    return %c0_i32, %c0_i32_0 : i32, i32
  }
  func.func @transform_17(%arg0: i32) -> (i32, i32) {
    %c0_i32 = arith.constant 0 : i32
    %c0_i32_0 = arith.constant 0 : i32
    %c0_i32_1 = arith.constant 0 : i32
    return %c0_i32, %c0_i32_0 : i32, i32
  }
  func.func @transform_18(%arg0: i32) -> (i32, i32) {
    %c0_i32 = arith.constant 0 : i32
    %c0_i32_0 = arith.constant 0 : i32
    %c0_i32_1 = arith.constant 0 : i32
    return %c0_i32, %c0_i32_0 : i32, i32
  }
  func.func @transform_19(%arg0: i32) -> (i32, i32) {
    %c0_i32 = arith.constant 0 : i32
    %c0_i32_0 = arith.constant 0 : i32
    %c0_i32_1 = arith.constant 0 : i32
    return %c0_i32, %c0_i32_0 : i32, i32
  }
  func.func @transform_20(%arg0: i32) -> (i32, i32) {
    %c0_i32 = arith.constant 0 : i32
    %c0_i32_0 = arith.constant 0 : i32
    %c0_i32_1 = arith.constant 0 : i32
    return %c0_i32, %c0_i32_0 : i32, i32
  }
  func.func @transform_21(%arg0: i32) -> (i32, i32) {
    %c0_i32 = arith.constant 0 : i32
    %c0_i32_0 = arith.constant 0 : i32
    %c0_i32_1 = arith.constant 0 : i32
    return %c0_i32, %c0_i32_0 : i32, i32
  }
  func.func @transform_22(%arg0: i32) -> (i32, i32) {
    %c0_i32 = arith.constant 0 : i32
    %c0_i32_0 = arith.constant 0 : i32
    %c0_i32_1 = arith.constant 0 : i32
    return %c0_i32, %c0_i32_0 : i32, i32
  }
  func.func @transform_23(%arg0: i32) -> (i32, i32) {
    %c0_i32 = arith.constant 0 : i32
    %c0_i32_0 = arith.constant 0 : i32
    %c0_i32_1 = arith.constant 0 : i32
    return %c0_i32, %c0_i32_0 : i32, i32
  }
  func.func @transform_24(%arg0: i32) -> (i32, i32) {
    %c0_i32 = arith.constant 0 : i32
    %c0_i32_0 = arith.constant 0 : i32
    %c0_i32_1 = arith.constant 0 : i32
    return %c0_i32, %c0_i32_0 : i32, i32
  }
  func.func @transform_25(%arg0: i32) -> (i32, i32) {
    %c0_i32 = arith.constant 0 : i32
    %c0_i32_0 = arith.constant 0 : i32
    %c0_i32_1 = arith.constant 0 : i32
    return %c0_i32, %c0_i32_0 : i32, i32
  }
  func.func @transform_26(%arg0: i32) -> (i32, i32) {
    %c0_i32 = arith.constant 0 : i32
    %c0_i32_0 = arith.constant 0 : i32
    %c0_i32_1 = arith.constant 0 : i32
    return %c0_i32, %c0_i32_0 : i32, i32
  }
  func.func @transform_27(%arg0: i32) -> (i32, i32) {
    %c0_i32 = arith.constant 0 : i32
    %c0_i32_0 = arith.constant 0 : i32
    %c0_i32_1 = arith.constant 0 : i32
    return %c0_i32, %c0_i32_0 : i32, i32
  }
  func.func @transform_28(%arg0: i32) -> (i32, i32) {
    %c0_i32 = arith.constant 0 : i32
    %c0_i32_0 = arith.constant 0 : i32
    %c0_i32_1 = arith.constant 0 : i32
    return %c0_i32, %c0_i32_0 : i32, i32
  }
  func.func @transform_29(%arg0: i32) -> (i32, i32) {
    %c0_i32 = arith.constant 0 : i32
    %c0_i32_0 = arith.constant 0 : i32
    %c0_i32_1 = arith.constant 0 : i32
    return %c0_i32, %c0_i32_0 : i32, i32
  }
  func.func @transform_30(%arg0: i32) -> (i32, i32) {
    %c0_i32 = arith.constant 0 : i32
    %c0_i32_0 = arith.constant 0 : i32
    %c0_i32_1 = arith.constant 0 : i32
    return %c0_i32, %c0_i32_0 : i32, i32
  }
  func.func @transform_31(%arg0: i32) -> (i32, i32) {
    %c0_i32 = arith.constant 0 : i32
    %c0_i32_0 = arith.constant 0 : i32
    %c0_i32_1 = arith.constant 0 : i32
    return %c0_i32, %c0_i32_0 : i32, i32
  }
  func.func @transform_32(%arg0: i32) -> (i32, i32, i32) {
    %c0_i32 = arith.constant 0 : i32
    %c0_i32_0 = arith.constant 0 : i32
    %c0_i32_1 = arith.constant 0 : i32
    return %arg0, %c0_i32, %c0_i32_0 : i32, i32, i32
  }
}

</mosaic_0001>

<bundles_post_ra>
// kernel: sakt_forward.1
= control target key start
LH: loop header
LB: loop body
LE: loop exit
PB: predicated region body
PF: predicated region fallthrough
CT: control target
= control target key end

     0   :  { %s4556_s6 = smov 1   ;;  %s4557_s10 = smov 2   ;;  %s5175_s0 = inlined_call_operand.smem [shape: u32[33], index: -1, kind: input, shape index: {}] }
   0x1   :  { %s4608_s5 = sld [smem:[%s5175_s0]]   ;;  %s4558_s14 = smov 3  }
   0x2   :  { %s4613_s9 = sld [smem:[%s5175_s0 + %s4556_s6]]   ;;  %s4559_s18 = smov 4  }
   0x3   :  { %s4618_s13 = sld [smem:[%s5175_s0 + %s4557_s10]]   ;;  %s4560_s22 = smov 5  }
   0x4   :  { %s4623_s17 = sld [smem:[%s5175_s0 + %s4558_s14]]   ;;  %s4561_s26 = smov 6  }
   0x5   :  { %s4628_s21 = sld [smem:[%s5175_s0 + %s4559_s18]]   ;;  %s4562_s30 = smov 7  }
   0x6   :  { %s4633_s25 = sld [smem:[%s5175_s0 + %s4560_s22]]   ;;  %s4563_s4 = smov 8  }
   0x7   :  { %5193 = sst [smem:[#allocation6_spill]] %s4608_s5  ;;  %s4564_s10 = smov 9  }
   0x8   :  { %5194 = sst [smem:[#allocation7_spill]] %s4613_s9  ;;  %s4565_s15 = smov 10  }
   0x9   :  { %s4638_s29 = sld [smem:[%s5175_s0 + %s4561_s26]]   ;;  %s4566_s20 = smov 11  }
   0xa   :  { %s4643_s3 = sld [smem:[%s5175_s0 + %s4562_s30]]   ;;  %s4567_s26 = smov 12  }
   0xb   :  { %s4648_s8 = sld [smem:[%s5175_s0 + %s4563_s4]]   ;;  %s4568_s1 = smov 13  }
   0xc   :  { %s4653_s14 = sld [smem:[%s5175_s0 + %s4564_s10]]   ;;  %s4569_s7 = smov 14  }
   0xd   :  { %s4658_s19 = sld [smem:[%s5175_s0 + %s4565_s15]]   ;;  %s4570_s15 = smov 15  }
   0xe   :  { %s4663_s24 = sld [smem:[%s5175_s0 + %s4566_s20]]   ;;  %s4571_s22 = smov 16  }
   0xf   :  { %s4668_s30 = sld [smem:[%s5175_s0 + %s4567_s26]]   ;;  %s4572_s28 = smov 17  }
  0x10   :  { %5195 = sst [smem:[#allocation8_spill]] %s4643_s3  ;;  %s4587_s23 = smov 32  }
  0x11   :  { %5196 = sst [smem:[#allocation9_spill]] %s4648_s8 }
  0x12   :  { %s4673_s6 = sld [smem:[%s5175_s0 + %s4568_s1]]  }
  0x13   :  { %s4678_s12 = sld [smem:[%s5175_s0 + %s4569_s7]]   ;;  %s4573_s7 = smov 18  }
  0x14   :  { %s4683_s20 = sld [smem:[%s5175_s0 + %s4570_s15]]   ;;  %s4574_s15 = smov 19  }
  0x15   :  { %s4688_s27 = sld [smem:[%s5175_s0 + %s4571_s22]]   ;;  %s4575_s22 = smov 20  }
  0x16   :  { %s4693_s4 = sld [smem:[%s5175_s0 + %s4572_s28]]   ;;  %s4576_s28 = smov 21  }
  0x18   :  { %5197 = sst [smem:[#allocation10_spill]] %s4673_s6 }
  0x19   :  { %5198 = sst [smem:[#allocation11_spill]] %s4678_s12 }
  0x1a   :  { %5199 = sst [smem:[#allocation12_spill]] %s4683_s20 }
  0x1b   :  { %5200 = sst [smem:[#allocation13_spill]] %s4688_s27 }
  0x1c   :  { %5201 = sst [smem:[#allocation14_spill]] %s4693_s4 }
  0x1d   :  { %s4698_s12 = sld [smem:[%s5175_s0 + %s4573_s7]]   ;;  %s4577_s7 = smov 22  }
  0x1e   :  { %s4703_s20 = sld [smem:[%s5175_s0 + %s4574_s15]]   ;;  %s4578_s15 = smov 23  }
  0x1f   :  { %s4708_s27 = sld [smem:[%s5175_s0 + %s4575_s22]]   ;;  %s4579_s22 = smov 24  }
  0x20   :  { %s4713_s4 = sld [smem:[%s5175_s0 + %s4576_s28]]   ;;  %s4580_s28 = smov 25  }
  0x23   :  { %5202 = sst [smem:[#allocation15_spill]] %s4698_s12 }
  0x24   :  { %5203 = sst [smem:[#allocation16_spill]] %s4703_s20 }
  0x25   :  { %5204 = sst [smem:[#allocation17_spill]] %s4708_s27 }
  0x26   :  { %5205 = sst [smem:[#allocation18_spill]] %s4713_s4 }
  0x27   :  { %s4718_s12 = sld [smem:[%s5175_s0 + %s4577_s7]]   ;;  %s4581_s7 = smov 26  }
  0x28   :  { %s4723_s20 = sld [smem:[%s5175_s0 + %s4578_s15]]   ;;  %s4582_s15 = smov 27  }
  0x29   :  { %s4728_s27 = sld [smem:[%s5175_s0 + %s4579_s22]]   ;;  %s4583_s22 = smov 28  }
  0x2a   :  { %s4733_s4 = sld [smem:[%s5175_s0 + %s4580_s28]]   ;;  %s4584_s28 = smov 29  }
  0x2d   :  { %5206 = sst [smem:[#allocation19_spill]] %s4718_s12 }
  0x2e   :  { %5207 = sst [smem:[#allocation20_spill]] %s4723_s20 }
  0x2f   :  { %5208 = sst [smem:[#allocation21_spill]] %s4728_s27 }
  0x30   :  { %5209 = sst [smem:[#allocation22_spill]] %s4733_s4 }
  0x31   :  { %s4738_s12 = sld [smem:[%s5175_s0 + %s4581_s7]]   ;;  %s4585_s7 = smov 30  }
  0x32   :  { %s4743_s20 = sld [smem:[%s5175_s0 + %s4582_s15]]   ;;  %s4586_s15 = smov 31  }
  0x33   :  { %s4748_s27 = sld [smem:[%s5175_s0 + %s4583_s22]]  }
  0x34   :  { %s4753_s4 = sld [smem:[%s5175_s0 + %s4584_s28]]  }
  0x37   :  { %5210 = sst [smem:[#allocation23_spill]] %s4738_s12 }
  0x38   :  { %5211 = sst [smem:[#allocation24_spill]] %s4743_s20 }
  0x39   :  { %5212 = sst [smem:[#allocation25_spill]] %s4748_s27 }
  0x3a   :  { %5213 = sst [smem:[#allocation26_spill]] %s4753_s4 }
  0x3b   :  { %s4758_s12 = sld [smem:[%s5175_s0 + %s4585_s7]]  }
  0x3c   :  { %s3941_s20 = sld [smem:[%s5175_s0 + %s4586_s15]]  }
  0x3d   :  { %s4766_s27 = sld [smem:[%s5175_s0 + %s4587_s23]]  }
  0x41   :  { %5214 = sst [smem:[#allocation27_spill]] %s4758_s12 }
  0x42   :  { %v70_v0 = vstv %s3941_s20 }
  0x43   :  { %71 = vst [vmem:[#allocation2] sm:$0x1] %v70_v0 }
  0x44   :  { %72 = vsyncpa [#allocation4], 0 }
  0x45   :  { %74 = vsyncpa [#allocation4 + $0x1], 0  ;;  %s4768_s28 = smov 0   ;;  %s4770_s1 = smov 0  }
  0x46   :  { %s4772_s2 = smov 0   ;;  %s4774_s7 = smov 0  }
  0x47 LB: > { %s4789_s0 = sadd.s32 4294967295, %s4554_s7   ;;  %s3944_s20 = sadd.s32 4294967294, %s4554_s7   ;;  %s4554_s7 = sphi %s4774_s7, %s5251_s7   ;;  %s4550_s2 = sphi %s4772_s2, %s5250_s2   ;;  %s4546_s1 = sphi %s4770_s1, %s5249_s1   ;;  %s4542_s28 = sphi %s4768_s28, %s5248_s28  }
  0x48   : > { %s4793_s10 = sadd.s32 1, %s4554_s7   ;;  %s769_s11 = sadd.s32 1, %s4550_s2 }
  0x49   : > { %s766_s15 = ssub.s32 %s4554_s7, %s4793_s10  ;;  %p779_p0 = scmp.ne.s32.totalorder %s4550_s2, %s4546_s1 }
  0x4a   : > { %p767_p1 = scmp.eq.s32.totalorder %s766_s15, 0  ;;  %p780_p2 = scmp.eq.s32.totalorder %s4789_s0, 1 }
  0x4b   : > { %p785_p3 = scmp.ne.s32.totalorder %s4546_s1, %s4542_s28  ;;  %p786_p4 = scmp.eq.s32.totalorder %s3944_s20, 1 }
  0x4c   : > { %s4804_s16 = scalar_select %p767_p1, %s4550_s2, %s769_s11  }
  0x4d   : > { %p4806_p5 = por %p780_p2, %p779_p0  ;;  %p4810_p6 = por %p786_p4, %p785_p3 }
  0x4e   : > { %p3947_p7 = scmp.ge.s32.totalorder %s4554_s7, 1  ;;  %p908_p8 = scmp.lt.s32.totalorder %s4554_s7, 3 }
  0x50   : > { %p909_p9 = pnand %p3947_p7, %p908_p8 }
  0x51   : > { %v1012_v1 = vld [vmem:[%s4628_s21] sm:$0xff] (!%p909_p9)  ;;  %v1013_v2 = vld [vmem:[%s4628_s21 + $0x8] sm:$0xff] (!%p909_p9)  ;;  %v4588_v4 = vmov (!%p909_p9), 0.0|0.0   ;;  %v1014_v7 = vld [vmem:[%s4628_s21 + $0x10] sm:$0xff] (!%p909_p9)  ;;  %p992_p10 = scmp.lt.s32.totalorder (!%p909_p9), %s4789_s0, 1  ;;  %s5217_s9 = sld [smem:[#allocation7_spill]] (!%p909_p9)  ;;  %v1002_v27 = vlaneseq (!%p909_p9) }
  0x52   : > { %912 = sbr.rel (%p909_p9) target bundleno = 7594 (0x1daa), region = 148  ;;  %v1007_v3 = vld [vmem:[%s4618_s13] sm:$0xff] (!%p909_p9)  ;;  %4323 = vmatprep.subr.bf16.mxu1 (!%p909_p9), %v4588_v4  ;;  %v4324_v5 = vpack.c.bf16 (!%p909_p9), %v1013_v2, %v1012_v1  ;;  %4317 = vmatprep.subr.bf16.mxu0 (!%p909_p9), %v4588_v4  ;;  %v1008_v6 = vld [vmem:[%s4618_s13 + $0x8] sm:$0xff] (!%p909_p9)  ;;  %v1015_v8 = vld [vmem:[%s4628_s21 + $0x18] sm:$0xff] (!%p909_p9)  ;;  %s5218_s5 = sld [smem:[#allocation6_spill]] (!%p909_p9)  ;;  %vm4589_vm0 = vmmov (!%p909_p9), 0  }
  0x53   : > { %v4318_v9 = vpack.c.bf16 (!%p909_p9), %v1008_v6, %v1007_v3  ;;  %v4590_v10 = vmov (!%p909_p9), 0.0   ;;  %v1009_v11 = vld [vmem:[%s4618_s13 + $0x10] sm:$0xff] (!%p909_p9)  ;;  %v1010_v12 = vld [vmem:[%s4618_s13 + $0x18] sm:$0xff] (!%p909_p9)  ;;  %v4327_v13 = vpack.c.bf16 (!%p909_p9), %v1015_v8, %v1014_v7  ;;  %vm1042_vm1 = vcmask (!%p909_p9), 261120   ;;  %v3952_v17 = vld [vmem:[%s4633_s25] ss:$0 sm:$0xff] (!%p909_p9) }
  0x54   : > { %4123 = vmatprep.mubr.msk.f32.mxu1 (!%p909_p9), %vm4589_vm0, %v4590_v10  ;;  %4112 = vmatprep.mubr.msk.f32.mxu0 (!%p909_p9), %vm4589_vm0, %v4590_v10  ;;  %v4321_v14 = vpack.c.bf16 (!%p909_p9), %v1010_v12, %v1009_v11  ;;  %v3950_v18 = vld [vmem:[%s4623_s17] ss:$0 sm:$0xff] (!%p909_p9)  ;;  %vm1195_vm2 = vcmask (!%p909_p9), 64512   ;;  %s5189_s15 = smov (!%p909_p9), 120   ;;  %v4869_v28 = vshrl.u32 (!%p909_p9), %v1002_v27, 7  ;;  %v1005_v29 = vand.u32 (!%p909_p9), 127, %v1002_v27 }
  0x55   : > { %4325 = vmatpush3.bf16.msra.mxu1 (!%p909_p9), %v4324_v5  ;;  %4319 = vmatpush3.bf16.msra.mxu0 (!%p909_p9), %v4318_v9  ;;  %v1018_v53 = vld [vmem:[%s4638_s29 + $0x8] sm:$0xff] (!%p909_p9)  ;;  %v1017_v58 = vld [vmem:[%s4638_s29] sm:$0xff] (!%p909_p9)  ;;  %s5221_s3 = sld [smem:[#allocation8_spill]] (!%p909_p9)  ;;  %s5222_s8 = sld [smem:[#allocation9_spill]] (!%p909_p9)  ;;  %vm3830_vm4 = vcmask (!%p909_p9), 57344  }
  0x56   : > { %4326 = vmatprep.subr.bf16.mxu1 (!%p909_p9), %v4588_v4  ;;  %4320 = vmatprep.subr.bf16.mxu0 (!%p909_p9), %v4588_v4  ;;  %vm4872_vm3 = vcmp.gt.s32.totalorder (!%p909_p9), %v1005_v29, %v4869_v28  ;;  %s5223_s6 = sld [smem:[#allocation10_spill]] (!%p909_p9)  ;;  %s5247_s12 = sld [smem:[#allocation27_spill]] (!%p909_p9) }
  0x57   : > { %s5246_s4 = sld [smem:[#allocation26_spill]] (!%p909_p9) }
  0x59   : > { %s993_s22 = scalar_select %p992_p10, %s4789_s0, 1  ;;  %4328 = vmatpush3.bf16.msra.mxu1 %v4327_v13  ;;  %4322 = vmatpush3.bf16.msra.mxu0 %v4321_v14 }
  0x5a   : > { %4131 = vmatprep.subr.mxu1 %v4590_v10  ;;  %4126 = vmatprep.subr.mxu0 %v4590_v10 }
  0x5b   : > { %s3948_s26 = sshll.u32 %s993_s22, 3  ;;  %s5187_s22 = smov 96  }
  0x5c   : > { %s999_s20 = scalar_lea.vmem %s5217_s9, %s3948_s26  ;;  %s995_s11 = scalar_lea.vmem %s5218_s5, %s3948_s26 }
  0x5d   : > { %v1001_v15 = vld [vmem:[%s999_s20] sm:$0xff]  ;;  %s5188_s26 = smov 88   ;;  %s5181_s20 = smov 112  }
  0x5e   : > { %v4836_v16 = vld [vmem:[%s995_s11] sm:$0xff]  ;;  %4124 = vmatmul.mubr.msk.f32.vlgmr.msra.gmra.mrb[0].mxu1 %vm1042_vm1, %v1001_v15  ;;  %s5183_s11 = smov 80   ;;  %s5230_s5 = smov 120  }
  0x5f   : > { %4113 = vmatmul.mubr.msk.f32.vlgmr.msra.gmra.mrb[0].mxu0 %vm1042_vm1, %v4836_v16  ;;  %4133 = vmatprep.mubr.msk.f32.mxu1 %vm4589_vm0, %v4590_v10 }
  0x60   : > { %4128 = vmatprep.mubr.msk.f32.mxu0 %vm4589_vm0, %v4590_v10 }
 0x131   : > { %v1191_v19 = vpop.f32.mrb[0].mxu1 }
 0x132   : > { %v4849_v20 = vadd.f32 %v3952_v17, %v1191_v19  ;;  %v4125_v21 = vpop.f32.mrb[1].mxu1  ;;  %v1112_v22 = vpop.f32.mrb[0].mxu0 }
 0x133   : > { %v4851_v23 = vadd.f32 %v3950_v18, %v1112_v22  ;;  %v4114_v24 = vpop.f32.mrb[1].mxu0 }
 0x134   : > { %1362 = vrot.lane.b32.xlu0 %v4849_v20, %s5189_s15  ;;  %4127 = vmatpush3.xpose.msk.msra.mxu0 %vm1195_vm2, %v4849_v20 }
 0x135   : > { %4136 = vmatprep.subr.mxu0 %v4590_v10 }
 0x137   : > { %4129 = vmatmul.mubr.msk.f32.vlgmr.msra.gmra.mrb[2].mxu0 %vm1195_vm2, %v4851_v23 }
 0x138   : > { %1360 = vrot.lane.b32.xlu0 %v4851_v23, %s5189_s15  ;;  %4138 = vmatprep.mubr.msk.f32.mxu0 %vm4589_vm0, %v4590_v10  ;;  %s5228_s15 = sld [smem:[#allocation14_spill]] }
 0x1a6   : > { %v1363_v25 = vpop.permute.xlu0 %1362 }
 0x1a7   : > { %4137 = vmatpush3.xpose.msk.msra.mxu0 %vm1195_vm2, %v1363_v25  ;;  %v1019_v25 = vld [vmem:[%s4638_s29 + $0x10] sm:$0xff] }
 0x1a8   : > { %4146 = vmatprep.subr.mxu0 %v4590_v10 }
 0x1aa   : > { %v1361_v26 = vpop.permute.xlu0 %1360 }
 0x1ab   : > { %4139 = vmatmul.mubr.msk.f32.vlgmr.msra.gmra.mrb[4].mxu0 %vm1195_vm2, %v1361_v26 }
 0x1ac   : > { %4148 = vmatprep.mubr.msk.f32.mxu0 %vm4589_vm0, %v4590_v10  ;;  %4147 = vmatpush3.msra.mxu0 %v1018_v53 }
 0x1ad   : > { %4156 = vmatprep.subr.mxu0 %v4590_v10 }
 0x20a   : > { %v1268_v31 = vpop.f32.mrb[2].mxu0 }
 0x20b   : > { %v1272_v32 = vsel %vm4872_vm3, -1e+30, %v1268_v31  ;;  %v4130_v33 = vpop.f32.mrb[3].mxu0 }
 0x20c   : > { %v1273_v34 = vsel %vm1195_vm2, %v1272_v32, -inf }
 0x20d   : > { %1274 = vmax.xlane.f32.xlu1 %v1273_v34 }
 0x27e   : > { %v1434_v35 = vpop.f32.mrb[4].mxu0 }
 0x27f   : > { %v1438_v36 = vsel %vm4872_vm3, -1e+30, %v1434_v35  ;;  %v4140_v37 = vpop.f32.mrb[5].mxu0 }
 0x280   : > { %v1439_v38 = vsel %vm1195_vm2, %v1438_v36, -inf }
 0x281   : > { %1440 = vmax.xlane.f32.xlu1 %v1439_v38 }
 0x292   : > { %1284 = vrot.lane.b32.xlu1 %v4849_v20, %s5187_s22  ;;  %s5226_s22 = sld [smem:[#allocation11_spill]] }
 0x29a   : > { %v1275_v39 = vpop.xlane.xlu1 %1274 }
 0x29b   : > { %v1276_v40 = vsub.f32 %v1272_v32, %v1275_v39  ;;  %v1020_v39 = vld [vmem:[%s4638_s29 + $0x18] sm:$0xff] }
 0x29d   : > { %v1277_v41 = vmul.f32 1.442695, %v1276_v40 }
 0x29f   : > { %4448 = vpow2.f32 %v1277_v41 }
 0x2a9   : > { %v4449_v42 = vpop.eup %4448 }
 0x2aa   : > { %v1279_v43 = vsel %vm1195_vm2, %v4449_v42, 0.0 }
 0x2ab   : > { %1280 = vadd.xlane.f32.xlu0 %v1279_v43 }
 0x30e   : > { %v1441_v44 = vpop.xlane.xlu1 %1440 }
 0x30f   : > { %v1442_v45 = vsub.f32 %v1438_v36, %v1441_v44 }
 0x311   : > { %v1443_v46 = vmul.f32 1.442695, %v1442_v45 }
 0x312   : > { %v1285_v47 = vpop.permute.xlu1 %1284 }
 0x313   : > { %4450 = vpow2.f32 %v1443_v46  ;;  %4132 = vmatpush3.msra.mxu1 %v1285_v47 }
 0x314   : > { %4141 = vmatprep.subr.mxu1 %v4590_v10 }
 0x31d   : > { %v4451_v48 = vpop.eup %4450 }
 0x31e   : > { %v1445_v49 = vsel %vm1195_vm2, %v4451_v48, 0.0 }
 0x31f   : > { %1446 = vadd.xlane.f32.xlu1 %v1445_v49 }
 0x330   : > { %1450 = vrot.lane.b32.xlu1 %v4849_v20, %s5188_s26  ;;  %s5227_s26 = sld [smem:[#allocation12_spill]] }
 0x334   : > { %1674 = vrot.lane.b32.xlu1 %v4849_v20, %s5181_s20 }
 0x338   : > { %v1281_v50 = vpop.xlane.xlu0 %1280  ;;  %1672 = vrot.lane.b32.xlu1 %v4851_v23, %s5181_s20  ;;  %s5185_s20 = smov 104  }
 0x339   : > { %4452 = vrcp.f32 %v1281_v50 }
 0x343   : > { %v4453_v51 = vpop.eup %4452 }
 0x344   : > { %v1283_v52 = vmul.f32 %v4453_v51, %v4449_v42 }
 0x346   : > { %4134 = vmatmul.mubr.msk.f32.vlgmr.msra.gmra.mrb[2].mxu1 %vm1195_vm2, %v1283_v52 }
 0x347   : > { %4143 = vmatprep.mubr.msk.f32.mxu1 %vm4589_vm0, %v4590_v10 }
 0x3ac   : > { %v1447_v54 = vpop.xlane.xlu1 %1446 }
 0x3ad   : > { %4454 = vrcp.f32 %v1447_v54 }
 0x3b0   : > { %v1451_v55 = vpop.permute.xlu1 %1450 }
 0x3b1   : > { %4142 = vmatpush3.msra.mxu1 %v1451_v55 }
 0x3b2   : > { %4151 = vmatprep.subr.mxu1 %v4590_v10 }
 0x3b4   : > { %v1675_v61 = vpop.permute.xlu1 %1674 }
 0x3b7   : > { %v4455_v56 = vpop.eup %4454 }
 0x3b8   : > { %v1449_v57 = vmul.f32 %v4455_v56, %v4451_v48  ;;  %v1673_v0 = vpop.permute.xlu1 %1672  ;;  %v3970_v48 = vld [vmem:[%s5221_s3] ss:$0 sm:$0xff]  ;;  %s5229_s3 = sld [smem:[#allocation16_spill]] }
 0x3ba   : > { %4144 = vmatmul.mubr.msk.f32.vlgmr.msra.gmra.mrb[4].mxu1 %vm1195_vm2, %v1449_v57 }
 0x3bb   : > { %4152 = vmatpush3.msra.mxu1 %v1017_v58  ;;  %4153 = vmatprep.mubr.msk.f32.mxu1 %vm4589_vm0, %v4590_v10 }
 0x3bc   : > { %4161 = vmatprep.subr.mxu1 %v4590_v10 }
 0x419   : > { %v1356_v59 = vpop.f32.mrb[2].mxu1 }
 0x41a   : > { %v4135_v60 = vpop.f32.mrb[3].mxu1  ;;  %4154 = vmatmul.mubr.msk.f32.vlgmr.msra.gmra.mrb[6].mxu1 %vm1195_vm2, %v1356_v59 }
 0x41b   : > { %4163 = vmatprep.mubr.msk.f32.mxu1 %vm4589_vm0, %v4590_v10  ;;  %v1024_v60 = vld [vmem:[%s4658_s19] sm:$0xff] }
 0x48d   : > { %v1522_v62 = vpop.f32.mrb[4].mxu1 }
 0x48e   : > { %v4145_v63 = vpop.f32.mrb[5].mxu1  ;;  %4149 = vmatmul.mubr.msk.f32.vlgmr.msra.gmra.mrb[6].mxu0 %vm1195_vm2, %v1522_v62 }
 0x48f   : > { %4157 = vmatpush3.xpose.msk.msra.mxu0 %vm1195_vm2, %v1675_v61  ;;  %4158 = vmatprep.mubr.msk.f32.mxu0 %vm4589_vm0, %v4590_v10  ;;  %v1025_v61 = vld [vmem:[%s4658_s19 + $0x8] sm:$0xff]  ;;  %v1026_v63 = vld [vmem:[%s4658_s19 + $0x10] sm:$0xff] }
 0x490   : > { %4166 = vmatprep.subr.mxu0 %v4590_v10  ;;  %v4330_v62 = vpack.c.bf16 %v1025_v61, %v1024_v60 }
 0x492   : > { %4159 = vmatmul.mubr.msk.f32.vlgmr.msra.gmra.mrb[8].mxu0 %vm1195_vm2, %v1673_v0  ;;  %v1027_v0 = vld [vmem:[%s4658_s19 + $0x18] sm:$0xff] }
 0x493   : > { %4168 = vmatprep.mubr.msk.f32.mxu0 %vm4589_vm0, %v4590_v10  ;;  %4167 = vmatpush3.msra.mxu0 %v1019_v25 }
 0x494   : > { %4176 = vmatprep.subr.mxu0 %v4590_v10 }
 0x4ed   : > { %v1668_v1 = vpop.f32.mrb[6].mxu1 }
 0x4ee   : > { %v4155_v2 = vpop.f32.mrb[7].mxu1 }
 0x4ef   : > { %v1029_v2 = vld [vmem:[%s4668_s30] sm:$0xff] }
 0x561   : > { %v1595_v3 = vpop.f32.mrb[6].mxu0 }
 0x562   : > { %v1669_v5 = vadd.f32 %v1668_v1, %v1595_v3  ;;  %v4150_v6 = vpop.f32.mrb[7].mxu0  ;;  %v4333_v1 = vpack.c.bf16 %v1027_v0, %v1026_v63  ;;  %v1030_v3 = vld [vmem:[%s4668_s30 + $0x8] sm:$0xff]  ;;  %v3981_v63 = vld [vmem:[%s5229_s3] ss:$0 sm:$0xff]  ;;  %s5232_s3 = smov 96  }
 0x565   : > { %v1746_v7 = vpop.f32.mrb[8].mxu0 }
 0x566   : > { %v1750_v8 = vsel %vm4872_vm3, -1e+30, %v1746_v7  ;;  %v4160_v9 = vpop.f32.mrb[9].mxu0 }
 0x567   : > { %v1751_v11 = vsel %vm1195_vm2, %v1750_v8, -inf }
 0x568   : > { %1752 = vmax.xlane.f32.xlu0 %v1751_v11  ;;  %v3971_v11 = vld [vmem:[%s5222_s8] ss:$0 sm:$0xff]  ;;  %s5244_s8 = sld [smem:[#allocation24_spill]] }
 0x57e   : > { %1762 = vrot.lane.b32.xlu0 %v4849_v20, %s5183_s11  ;;  %s5184_s11 = smov 72  }
 0x582   : > { %1914 = vrot.lane.b32.xlu0 %v4849_v20, %s5185_s20 }
 0x586   : > { %1912 = vrot.lane.b32.xlu0 %v4851_v23, %s5185_s20  ;;  %s5225_s20 = sld [smem:[#allocation13_spill]] }
 0x5f5   : > { %v1753_v12 = vpop.xlane.xlu0 %1752 }
 0x5f6   : > { %v1754_v13 = vsub.f32 %v1750_v8, %v1753_v12 }
 0x5f8   : > { %v1755_v14 = vmul.f32 1.442695, %v1754_v13  ;;  %v3972_v13 = vld [vmem:[%s4653_s14] ss:$0 sm:$0xff] }
 0x5f9   : > { %v1763_v15 = vpop.permute.xlu0 %1762 }
 0x5fa   : > { %4456 = vpow2.f32 %v1755_v14  ;;  %4162 = vmatpush3.msra.mxu1 %v1763_v15 }
 0x5fb   : > { %4171 = vmatprep.subr.mxu1 %v4590_v10 }
 0x5fd   : > { %v1915_v22 = vpop.permute.xlu0 %1914 }
 0x601   : > { %v1913_v23 = vpop.permute.xlu0 %1912 }
 0x604   : > { %v4457_v17 = vpop.eup %4456 }
 0x605   : > { %v1757_v18 = vsel %vm1195_vm2, %v4457_v17, 0.0 }
 0x606   : > { %1758 = vadd.xlane.f32.xlu1 %v1757_v18  ;;  %v1032_v18 = vld [vmem:[%s4668_s30 + $0x18] sm:$0xff] }
 0x693   : > { %v1759_v19 = vpop.xlane.xlu1 %1758 }
 0x694   : > { %4458 = vrcp.f32 %v1759_v19 }
 0x69e   : > { %v4459_v21 = vpop.eup %4458 }
 0x69f   : > { %v1761_v24 = vmul.f32 %v4459_v21, %v4457_v17  ;;  %v1031_v17 = vld [vmem:[%s4668_s30 + $0x10] sm:$0xff]  ;;  %v3973_v21 = vld [vmem:[%s4663_s24] ss:$0 sm:$0xff] }
 0x6a0   : > { %v4339_v19 = vpack.c.bf16 %v1032_v18, %v1031_v17 }
 0x6a1   : > { %4164 = vmatmul.mubr.msk.f32.vlgmr.msra.gmra.mrb[8].mxu1 %vm1195_vm2, %v1761_v24 }
 0x6a2   : > { %4172 = vmatpush3.xpose.msk.msra.mxu1 %vm1195_vm2, %v1915_v22  ;;  %4173 = vmatprep.mubr.msk.f32.mxu1 %vm4589_vm0, %v4590_v10 }
 0x6a3   : > { %4181 = vmatprep.subr.mxu1 %v4590_v10 }
 0x6a5   : > { %4174 = vmatmul.mubr.msk.f32.vlgmr.msra.gmra.mrb[10].mxu1 %vm1195_vm2, %v1913_v23 }
 0x6a6   : > { %4183 = vmatprep.mubr.msk.f32.mxu1 %vm4589_vm0, %v4590_v10  ;;  %4182 = vmatpush3.msra.mxu1 %v1020_v39 }
 0x6a7   : > { %4335 = vmatprep.subr.bf16.mxu1 %v4588_v4 }
 0x774   : > { %v1834_v26 = vpop.f32.mrb[8].mxu1 }
 0x775   : > { %v4165_v27 = vpop.f32.mrb[9].mxu1  ;;  %4169 = vmatmul.mubr.msk.f32.vlgmr.msra.gmra.mrb[10].mxu0 %vm1195_vm2, %v1834_v26  ;;  %v3975_v26 = vld [vmem:[%s5223_s6] ss:$0 sm:$0xff]  ;;  %s5243_s6 = sld [smem:[#allocation22_spill]] }
 0x776   : > { %4178 = vmatprep.mubr.msk.f32.mxu0 %vm4589_vm0, %v4590_v10 }
 0x778   : > { %v1986_v29 = vpop.f32.mrb[10].mxu1 }
 0x779   : > { %v1990_v31 = vsel %vm4872_vm3, -1e+30, %v1986_v29  ;;  %v4175_v32 = vpop.f32.mrb[11].mxu1 }
 0x77a   : > { %v1991_v33 = vsel %vm1195_vm2, %v1990_v31, -inf }
 0x77b   : > { %1992 = vmax.xlane.f32.xlu0 %v1991_v33 }
 0x808   : > { %v1993_v34 = vpop.xlane.xlu0 %1992 }
 0x809   : > { %v1994_v35 = vsub.f32 %v1990_v31, %v1993_v34 }
 0x80b   : > { %v1995_v36 = vmul.f32 1.442695, %v1994_v35 }
 0x80d   : > { %4460 = vpow2.f32 %v1995_v36 }
 0x817   : > { %v4461_v37 = vpop.eup %4460 }
 0x818   : > { %v1997_v38 = vsel %vm1195_vm2, %v4461_v37, 0.0 }
 0x819   : > { %1998 = vadd.xlane.f32.xlu1 %v1997_v38 }
 0x82a   : > { %2002 = vrot.lane.b32.xlu1 %v4849_v20, %s5184_s11  ;;  %s5224_s11 = sld [smem:[#allocation15_spill]] }
 0x830   : > { %v2380_v39 = vld [vmem:[%s5224_s11] sm:$0xff] }
 0x848   : > { %v1907_v40 = vpop.f32.mrb[10].mxu0 }
 0x849   : > { %v1911_v41 = vadd.f32 %v1907_v40, %v1669_v5  ;;  %v4170_v42 = vpop.f32.mrb[11].mxu0  ;;  %v4336_v5 = vpack.c.bf16 %v1030_v3, %v1029_v2  ;;  %v2381_v40 = vld [vmem:[%s5224_s11 + $0x8] sm:$0xff] }
 0x84a   : > { %v2375_v42 = vld [vmem:[%s5225_s20] sm:$0xff] }
 0x8a6   : > { %v1999_v43 = vpop.xlane.xlu1 %1998 }
 0x8a7   : > { %4462 = vrcp.f32 %v1999_v43  ;;  %v2376_v43 = vld [vmem:[%s5225_s20 + $0x8] sm:$0xff] }
 0x8aa   : > { %v2003_v44 = vpop.permute.xlu1 %2002 }
 0x8ab   : > { %4177 = vmatpush3.msra.mxu0 %v2003_v44  ;;  %v4342_v44 = vpack.c.bf16 %v2376_v43, %v2375_v42 }
 0x8ac   : > { %4329 = vmatprep.subr.bf16.mxu0 %v4588_v4 }
 0x8b1   : > { %v4463_v45 = vpop.eup %4462 }
 0x8b2   : > { %v2001_v46 = vmul.f32 %v4463_v45, %v4461_v37  ;;  %v2382_v45 = vld [vmem:[%s5224_s11 + $0x10] sm:$0xff] }
 0x8b4   : > { %4179 = vmatmul.mubr.msk.f32.vlgmr.msra.gmra.mrb[12].mxu0 %vm1195_vm2, %v2001_v46  ;;  %v2383_v46 = vld [vmem:[%s5224_s11 + $0x18] sm:$0xff]  ;;  %s4599_s11 = smov [#allocation3]  }
 0x8b5   : > { %4194 = vmatprep.mubr.msk.f32.mxu0 %vm4589_vm0, %v4590_v10  ;;  %4331 = vmatpush3.bf16.msra.mxu0 %v4330_v62 }
 0x8b6   : > { %4332 = vmatprep.subr.bf16.mxu0 %v4588_v4 }
 0x8b9   : > { %4334 = vmatpush3.bf16.msra.mxu0 %v4333_v1 }
 0x8ba   : > { %4341 = vmatprep.subr.bf16.mxu0 %v4588_v4 }
 0x987   : > { %v2074_v20 = vpop.f32.mrb[12].mxu0 }
 0x988   : > { %v4180_v47 = vpop.f32.mrb[13].mxu0  ;;  %4184 = vmatmul.mubr.msk.f32.vlgmr.msra.gmra.mrb[12].mxu1 %vm1195_vm2, %v2074_v20  ;;  %v2377_v20 = vld [vmem:[%s5225_s20 + $0x10] sm:$0xff] }
 0x989   : > { %4205 = vmatprep.mubr.msk.f32.mxu1 %vm4589_vm0, %v4590_v10  ;;  %4337 = vmatpush3.bf16.msra.mxu1 %v4336_v5  ;;  %v4351_v47 = vpack.c.bf16 %v2383_v46, %v2382_v45 }
 0x98a   : > { %4338 = vmatprep.subr.bf16.mxu1 %v4588_v4 }
 0x98d   : > { %4340 = vmatpush3.bf16.msra.mxu1 %v4339_v19 }
 0x98e   : > { %4347 = vmatprep.subr.bf16.mxu1 %v4588_v4 }
 0xa5b   : > { %v2147_v49 = vpop.f32.mrb[12].mxu1 }
 0xa5c   : > { %v2151_v50 = vadd.f32 %v2147_v49, %v1911_v41  ;;  %v4185_v51 = vpop.f32.mrb[13].mxu1  ;;  %v4348_v41 = vpack.c.bf16 %v2381_v40, %v2380_v39 }
 0xa5e   : > { %v2158_v52 = vadd.f32 %v3970_v48, %v2151_v50  ;;  %v2378_v48 = vld [vmem:[%s5225_s20 + $0x18] sm:$0xff] }
 0xa5f   : > { %v4345_v49 = vpack.c.bf16 %v2378_v48, %v2377_v20 }
 0xa60   : > { %v2159_v53 = vadd.f32 %v2158_v52, %v4836_v16 }
 0xa62   : > { %v2160_v54 = vsel %vm1042_vm1, %v2159_v53, 0.0 }
 0xa63   : > { %2161 = vadd.xlane.f32.xlu1 %v2160_v54  ;;  %v3977_v54 = vld [vmem:[%s5226_s22] ss:$0 sm:$0xff]  ;;  %s5234_s22 = sld [smem:[#allocation17_spill]] }
 0xaf0   : > { %v2162_v55 = vpop.xlane.xlu1 %2161 }
 0xaf1   : > { %v2164_v56 = vmul.f32 0.03125, %v2162_v55 }
 0xaf3   : > { %v2165_v57 = vsub.f32 %v2159_v53, %v2164_v56  ;;  %v3978_v56 = vld [vmem:[%s5227_s26] ss:$0 sm:$0xff]  ;;  %s5235_s26 = smov 104  }
 0xaf5   : > { %v2166_v58 = vmul.f32 %v2165_v57, %v2165_v57 }
 0xaf7   : > { %v2167_v59 = vsel %vm1042_vm1, %v2166_v58, 0.0 }
 0xaf8   : > { %2168 = vadd.xlane.f32.xlu0 %v2167_v59  ;;  %v3979_v59 = vld [vmem:[%s5228_s15] ss:$0 sm:$0xff]  ;;  %s5233_s15 = smov 112  }
 0xb85   : > { %v2169_v6 = vpop.xlane.xlu0 %2168 }
 0xb86   : > { %v2170_v7 = vmul.f32 0.03125, %v2169_v6 }
 0xb88   : > { %v2171_v8 = vadd.f32 1e-05, %v2170_v7 }
 0xb8a   : > { %4464 = vrsqrt.f32 %v2171_v8 }
 0xb94   : > { %v4465_v9 = vpop.eup %4464 }
 0xb95   : > { %v2173_v12 = vmul.f32 %v4465_v9, %v2165_v57 }
 0xb97   : > { %v2180_v14 = vmul.f32 %v3971_v11, %v2173_v12 }
 0xb99   : > { %v2187_v15 = vadd.f32 %v3972_v13, %v2180_v14 }
 0xb9b   : > { %4195 = vmatmul.mubr.msk.f32.vlgmr.msra.gmra.mrb[14].mxu0 %vm1042_vm1, %v2187_v15 }
 0xb9c   : > { %4216 = vmatprep.mubr.msk.f32.mxu0 %vm4589_vm0, %v4590_v10  ;;  %4343 = vmatpush3.bf16.msra.mxu0 %v4342_v44 }
 0xb9d   : > { %4344 = vmatprep.subr.bf16.mxu0 %v4588_v4 }
 0xba0   : > { %4346 = vmatpush3.bf16.msra.mxu0 %v4345_v49 }
 0xba1   : > { %4230 = vmatprep.subr.mxu0 %v4590_v10 }
 0xba3   : > { %4217 = vmatmul.mubr.msk.f32.vlgmr.msra.gmra.mrb[16].mxu0 %vm1042_vm1, %v4836_v16 }
 0xba4   : > { %4232 = vmatprep.mubr.msk.f32.mxu0 %vm4589_vm0, %v4590_v10 }
 0xc6e   : > { %v2263_v22 = vpop.f32.mrb[14].mxu0 }
 0xc6f   : > { %v2264_v24 = vadd.f32 %v3973_v21, %v2263_v22  ;;  %v4196_v23 = vpop.f32.mrb[15].mxu0 }
 0xc71   : > { %v2267_v25 = vmax.f32 %v2264_v24, 0.0 }
 0xc73   : > { %4206 = vmatmul.mubr.msk.f32.vlgmr.msra.gmra.mrb[14].mxu1 %vm1042_vm1, %v2267_v25 }
 0xc74   : > { %4227 = vmatprep.mubr.msk.f32.mxu1 %vm4589_vm0, %v4590_v10  ;;  %4349 = vmatpush3.bf16.msra.mxu1 %v4348_v41 }
 0xc75   : > { %4350 = vmatprep.subr.bf16.mxu1 %v4588_v4 }
 0xc76   : > { %v2476_v60 = vpop.f32.mrb[16].mxu0 }
 0xc77   : > { %v5004_v61 = vadd.f32 %v3979_v59, %v2476_v60  ;;  %v4218_v62 = vpop.f32.mrb[17].mxu0 }
 0xc78   : > { %4352 = vmatpush3.bf16.msra.mxu1 %v4351_v47 }
 0xc79   : > { %4235 = vmatprep.subr.mxu1 %v4590_v10  ;;  %2723 = vrot.lane.b32.xlu1 %v5004_v61, %s5230_s5 }
 0xceb   : > { %v2724_v5 = vpop.permute.xlu1 %2723 }
 0xd46   : > { %v2343_v27 = vpop.f32.mrb[14].mxu1 }
 0xd47   : > { %v2344_v29 = vadd.f32 %v3975_v26, %v2343_v27  ;;  %v4207_v31 = vpop.f32.mrb[15].mxu1 }
 0xd49   : > { %v2347_v32 = vadd.f32 %v2344_v29, %v2187_v15 }
 0xd4b   : > { %v2348_v33 = vsel %vm1042_vm1, %v2347_v32, 0.0 }
 0xd4c   : > { %2349 = vadd.xlane.f32.xlu0 %v2348_v33 }
 0xdd9   : > { %v2350_v34 = vpop.xlane.xlu0 %2349 }
 0xdda   : > { %v2351_v35 = vmul.f32 0.03125, %v2350_v34 }
 0xddc   : > { %v2352_v36 = vsub.f32 %v2347_v32, %v2351_v35 }
 0xdde   : > { %v2353_v37 = vmul.f32 %v2352_v36, %v2352_v36 }
 0xde0   : > { %v2354_v38 = vsel %vm1042_vm1, %v2353_v37, 0.0  ;;  %v2385_v37 = vld [vmem:[%s5234_s22] sm:$0xff] }
 0xde1   : > { %2355 = vadd.xlane.f32.xlu0 %v2354_v38  ;;  %v2386_v38 = vld [vmem:[%s5234_s22 + $0x8] sm:$0xff] }
 0xe6e   : > { %v2356_v50 = vpop.xlane.xlu0 %2355 }
 0xe6f   : > { %v2357_v51 = vmul.f32 0.03125, %v2356_v50 }
 0xe71   : > { %v2358_v52 = vadd.f32 1e-05, %v2357_v51 }
 0xe73   : > { %4466 = vrsqrt.f32 %v2358_v52 }
 0xe7d   : > { %v4467_v53 = vpop.eup %4466 }
 0xe7e   : > { %v2360_v55 = vmul.f32 %v4467_v53, %v2352_v36 }
 0xe80   : > { %v2367_v57 = vmul.f32 %v3977_v54, %v2360_v55 }
 0xe82   : > { %v2374_v58 = vadd.f32 %v3978_v56, %v2367_v57 }
 0xe84   : > { %4228 = vmatmul.mubr.msk.f32.vlgmr.msra.gmra.mrb[16].mxu1 %vm1042_vm1, %v2374_v58 }
 0xe85   : > { %4237 = vmatprep.mubr.msk.f32.mxu1 %vm4589_vm0, %v4590_v10 }
 0xf57   : > { %v2555_v0 = vpop.f32.mrb[16].mxu1 }
 0xf58   : > { %v5009_v1 = vadd.f32 %v3981_v63, %v2555_v0  ;;  %v4229_v2 = vpop.f32.mrb[17].mxu1  ;;  %v2387_v0 = vld [vmem:[%s5234_s22 + $0x10] sm:$0xff] }
 0xf5a   : > { %2725 = vrot.lane.b32.xlu0 %v5009_v1, %s5230_s5  ;;  %4231 = vmatpush3.xpose.msk.msra.mxu0 %vm1195_vm2, %v5009_v1  ;;  %s5231_s5 = smov 88  }
 0xf5b   : > { %4240 = vmatprep.subr.mxu0 %v4590_v10 }
 0xf5d   : > { %4233 = vmatmul.mubr.msk.f32.vlgmr.msra.gmra.mrb[18].mxu0 %vm1195_vm2, %v5004_v61 }
 0xf5e   : > { %4242 = vmatprep.mubr.msk.f32.mxu0 %vm4589_vm0, %v4590_v10 }
 0xfcc   : > { %v2726_v3 = vpop.permute.xlu0 %2725 }
 0xfcd   : > { %4241 = vmatpush3.xpose.msk.msra.mxu0 %vm1195_vm2, %v2726_v3 }
 0xfce   : > { %4250 = vmatprep.subr.mxu0 %v4590_v10 }
 0xfd0   : > { %4243 = vmatmul.mubr.msk.f32.vlgmr.msra.gmra.mrb[20].mxu0 %vm1195_vm2, %v2724_v5 }
 0xfd1   : > { %4252 = vmatprep.mubr.msk.f32.mxu0 %vm4589_vm0, %v4590_v10  ;;  %4251 = vmatpush3.msra.mxu0 %v2386_v38 }
 0xfd2   : > { %4260 = vmatprep.subr.mxu0 %v4590_v10 }
0x1030   : > { %v2631_v6 = vpop.f32.mrb[18].mxu0 }
0x1031   : > { %v2635_v7 = vsel %vm4872_vm3, -1e+30, %v2631_v6  ;;  %v4234_v8 = vpop.f32.mrb[19].mxu0 }
0x1032   : > { %v2636_v9 = vsel %vm1195_vm2, %v2635_v7, -inf }
0x1033   : > { %2637 = vmax.xlane.f32.xlu0 %v2636_v9 }
0x10a3   : > { %v2797_v11 = vpop.f32.mrb[20].mxu0 }
0x10a4   : > { %v2801_v12 = vsel %vm4872_vm3, -1e+30, %v2797_v11  ;;  %v4244_v13 = vpop.f32.mrb[21].mxu0 }
0x10a5   : > { %v2802_v14 = vsel %vm1195_vm2, %v2801_v12, -inf }
0x10a6   : > { %2803 = vmax.xlane.f32.xlu1 %v2802_v14 }
0x10b7   : > { %2813 = vrot.lane.b32.xlu1 %v5009_v1, %s5231_s5  ;;  %s5236_s5 = smov 80  }
0x10c0   : > { %v2638_v15 = vpop.xlane.xlu0 %2637 }
0x10c1   : > { %v2639_v17 = vsub.f32 %v2635_v7, %v2638_v15  ;;  %v2388_v15 = vld [vmem:[%s5234_s22 + $0x18] sm:$0xff] }
0x10c3   : > { %v2640_v18 = vmul.f32 1.442695, %v2639_v17 }
0x10c5   : > { %4468 = vpow2.f32 %v2640_v18 }
0x10cf   : > { %v4469_v19 = vpop.eup %4468 }
0x10d0   : > { %v2642_v21 = vsel %vm1195_vm2, %v4469_v19, 0.0 }
0x10d1   : > { %2643 = vadd.xlane.f32.xlu0 %v2642_v21 }
0x1133   : > { %v2804_v22 = vpop.xlane.xlu1 %2803 }
0x1134   : > { %v2805_v24 = vsub.f32 %v2801_v12, %v2804_v22 }
0x1136   : > { %v2806_v23 = vmul.f32 1.442695, %v2805_v24 }
0x1137   : > { %v2814_v34 = vpop.permute.xlu1 %2813 }
0x1138   : > { %4470 = vpow2.f32 %v2806_v23 }
0x1142   : > { %v4471_v25 = vpop.eup %4470 }
0x1143   : > { %v2808_v26 = vsel %vm1195_vm2, %v4471_v25, 0.0 }
0x1144   : > { %2809 = vadd.xlane.f32.xlu0 %v2808_v26 }
0x115a   : > { %2647 = vrot.lane.b32.xlu0 %v5009_v1, %s5232_s3  ;;  %s5237_s3 = smov 72  }
0x115e   : > { %3037 = vrot.lane.b32.xlu0 %v5009_v1, %s5233_s15  ;;  %v2644_v27 = vpop.xlane.xlu0 %2643 }
0x115f   : > { %4472 = vrcp.f32 %v2644_v27 }
0x1162   : > { %3035 = vrot.lane.b32.xlu0 %v5004_v61, %s5233_s15  ;;  %s5238_s15 = sld [smem:[#allocation18_spill]] }
0x1169   : > { %v4473_v31 = vpop.eup %4472 }
0x116a   : > { %v2646_v32 = vmul.f32 %v4473_v31, %v4469_v19 }
0x11d1   : > { %v2810_v29 = vpop.xlane.xlu0 %2809 }
0x11d2   : > { %4474 = vrcp.f32 %v2810_v29 }
0x11d5   : > { %v2648_v33 = vpop.permute.xlu0 %2647 }
0x11d6   : > { %4236 = vmatpush3.msra.mxu1 %v2648_v33 }
0x11d7   : > { %4238 = vmatmul.mubr.msk.f32.vlgmr.msra.gmra.mrb[18].mxu1 %vm1195_vm2, %v2646_v32  ;;  %4245 = vmatprep.subr.mxu1 %v4590_v10 }
0x11d8   : > { %4246 = vmatpush3.msra.mxu1 %v2814_v34  ;;  %4247 = vmatprep.mubr.msk.f32.mxu1 %vm4589_vm0, %v4590_v10 }
0x11d9   : > { %4255 = vmatprep.subr.mxu1 %v4590_v10  ;;  %v3038_v41 = vpop.permute.xlu0 %3037 }
0x11dc   : > { %v4475_v35 = vpop.eup %4474 }
0x11dd   : > { %v2812_v36 = vmul.f32 %v4475_v35, %v4471_v25  ;;  %v3036_v44 = vpop.permute.xlu0 %3035  ;;  %v3999_v25 = vld [vmem:[%s5238_s15] ss:$0 sm:$0xff]  ;;  %s5242_s15 = sld [smem:[#allocation20_spill]] }
0x11df   : > { %4248 = vmatmul.mubr.msk.f32.vlgmr.msra.gmra.mrb[20].mxu1 %vm1195_vm2, %v2812_v36 }
0x11e0   : > { %4257 = vmatprep.mubr.msk.f32.mxu1 %vm4589_vm0, %v4590_v10  ;;  %4256 = vmatpush3.msra.mxu1 %v2385_v37 }
0x11e1   : > { %4265 = vmatprep.subr.mxu1 %v4590_v10 }
0x12aa   : > { %v2719_v39 = vpop.f32.mrb[18].mxu1 }
0x12ab   : > { %v4239_v40 = vpop.f32.mrb[19].mxu1  ;;  %4258 = vmatmul.mubr.msk.f32.vlgmr.msra.gmra.mrb[22].mxu1 %vm1195_vm2, %v2719_v39 }
0x12ac   : > { %4267 = vmatprep.mubr.msk.f32.mxu1 %vm4589_vm0, %v4590_v10 }
0x12b2   : > { %v2885_v42 = vpop.f32.mrb[20].mxu1 }
0x12b3   : > { %v4249_v43 = vpop.f32.mrb[21].mxu1  ;;  %4253 = vmatmul.mubr.msk.f32.vlgmr.msra.gmra.mrb[22].mxu0 %vm1195_vm2, %v2885_v42 }
0x12b4   : > { %4261 = vmatpush3.xpose.msk.msra.mxu0 %vm1195_vm2, %v3038_v41  ;;  %4262 = vmatprep.mubr.msk.f32.mxu0 %vm4589_vm0, %v4590_v10 }
0x12b5   : > { %4270 = vmatprep.subr.mxu0 %v4590_v10 }
0x12b7   : > { %4263 = vmatmul.mubr.msk.f32.vlgmr.msra.gmra.mrb[24].mxu0 %vm1195_vm2, %v3036_v44 }
0x12b8   : > { %4272 = vmatprep.mubr.msk.f32.mxu0 %vm4589_vm0, %v4590_v10  ;;  %4271 = vmatpush3.msra.mxu0 %v2387_v0 }
0x12b9   : > { %4280 = vmatprep.subr.mxu0 %v4590_v10 }
0x137e   : > { %v3031_v45 = vpop.f32.mrb[22].mxu1 }
0x137f   : > { %v4259_v46 = vpop.f32.mrb[23].mxu1 }
0x1386   : > { %v2958_v20 = vpop.f32.mrb[22].mxu0 }
0x1387   : > { %v3032_v47 = vadd.f32 %v3031_v45, %v2958_v20  ;;  %v4254_v48 = vpop.f32.mrb[23].mxu0 }
0x138a   : > { %v3109_v49 = vpop.f32.mrb[24].mxu0 }
0x138b   : > { %v3113_v50 = vsel %vm4872_vm3, -1e+30, %v3109_v49  ;;  %v4264_v51 = vpop.f32.mrb[25].mxu0 }
0x138c   : > { %v3114_v52 = vsel %vm1195_vm2, %v3113_v50, -inf }
0x138d   : > { %3115 = vmax.xlane.f32.xlu1 %v3114_v52  ;;  %v4001_v52 = vld [vmem:[%s5242_s15] ss:$0 sm:$0xff] }
0x139e   : > { %3277 = vrot.lane.b32.xlu1 %v5009_v1, %s5235_s26 }
0x13a2   : > { %3275 = vrot.lane.b32.xlu1 %v5004_v61, %s5235_s26  ;;  %s5239_s26 = sld [smem:[#allocation21_spill]] }
0x13a8   : > { %v2392_v39 = vld [vmem:[%s5239_s26] sm:$0xff]  ;;  %v2393_v40 = vld [vmem:[%s5239_s26 + $0x8] sm:$0xff]  ;;  %v2394_v42 = vld [vmem:[%s5239_s26 + $0x10] sm:$0xff] }
0x13a9   : > { %v4354_v41 = vpack.c.bf16 %v2393_v40, %v2392_v39  ;;  %v2395_v43 = vld [vmem:[%s5239_s26 + $0x18] sm:$0xff] }
0x141a   : > { %v3116_v53 = vpop.xlane.xlu1 %3115 }
0x141b   : > { %v3117_v54 = vsub.f32 %v3113_v50, %v3116_v53 }
0x141d   : > { %v3118_v55 = vmul.f32 1.442695, %v3117_v54 }
0x141e   : > { %v3278_v61 = vpop.permute.xlu1 %3277 }
0x141f   : > { %4476 = vpow2.f32 %v3118_v55 }
0x1422   : > { %v3276_v63 = vpop.permute.xlu1 %3275 }
0x1429   : > { %v4477_v56 = vpop.eup %4476 }
0x142a   : > { %v3120_v57 = vsel %vm1195_vm2, %v4477_v56, 0.0 }
0x142b   : > { %3121 = vadd.xlane.f32.xlu0 %v3120_v57  ;;  %v4002_v57 = vld [vmem:[%s5243_s6] ss:$0 sm:$0xff]  ;;  %s4011_s6 = sshll.u32 %s4789_s0, 4  ;;  %s4496_s0 = sshll.u32 %s4599_s11, 4  ;;  %s4497_s0 = int_to_ptr.vmem [resolvable:$false] %s4496_s0 }
0x1441   : > { %3125 = vrot.lane.b32.xlu0 %v5009_v1, %s5236_s5  ;;  %s5240_s5 = sld [smem:[#allocation23_spill]] }
0x1447   : > { %v2397_v44 = vld [vmem:[%s5240_s5] sm:$0xff]  ;;  %v2398_v45 = vld [vmem:[%s5240_s5 + $0x8] sm:$0xff]  ;;  %v2399_v55 = vld [vmem:[%s5240_s5 + $0x10] sm:$0xff] }
0x1448   : > { %v4360_v46 = vpack.c.bf16 %v2398_v45, %v2397_v44 }
0x14b8   : > { %v3122_v58 = vpop.xlane.xlu0 %3121 }
0x14b9   : > { %4478 = vrcp.f32 %v3122_v58 }
0x14bc   : > { %v3126_v59 = vpop.permute.xlu0 %3125 }
0x14bd   : > { %4266 = vmatpush3.msra.mxu1 %v3126_v59 }
0x14be   : > { %4275 = vmatprep.subr.mxu1 %v4590_v10 }
0x14c3   : > { %v4479_v60 = vpop.eup %4478 }
0x14c4   : > { %v3124_v62 = vmul.f32 %v4479_v60, %v4477_v56  ;;  %v2400_v56 = vld [vmem:[%s5240_s5 + $0x18] sm:$0xff] }
0x14c6   : > { %4268 = vmatmul.mubr.msk.f32.vlgmr.msra.gmra.mrb[24].mxu1 %vm1195_vm2, %v3124_v62  ;;  %v4004_v62 = vld [vmem:[%s5244_s8] ss:$0 sm:$0xff]  ;;  %s990_s8 = sand.u32 1, %s4546_s1  }
0x14c7   : > { %4276 = vmatpush3.xpose.msk.msra.mxu1 %vm1195_vm2, %v3278_v61  ;;  %4277 = vmatprep.mubr.msk.f32.mxu1 %vm4589_vm0, %v4590_v10  ;;  %s991_s15 = scalar_lea.vmem [#allocation3], %s990_s8  ;;  %s3833_s5 = scalar_lea.sflag [#allocation4], %s990_s8 }
0x14c8   : > { %4285 = vmatprep.subr.mxu1 %v4590_v10 }
0x14ca   : > { %4278 = vmatmul.mubr.msk.f32.vlgmr.msra.gmra.mrb[26].mxu1 %vm1195_vm2, %v3276_v63 }
0x14cb   : > { %4287 = vmatprep.mubr.msk.f32.mxu1 %vm4589_vm0, %v4590_v10  ;;  %4286 = vmatpush3.msra.mxu1 %v2388_v15 }
0x14cc   : > { %4359 = vmatprep.subr.bf16.mxu1 %v4588_v4 }
0x1599   : > { %v3197_v2 = vpop.f32.mrb[24].mxu1 }
0x159a   : > { %v4269_v3 = vpop.f32.mrb[25].mxu1  ;;  %4273 = vmatmul.mubr.msk.f32.vlgmr.msra.gmra.mrb[26].mxu0 %vm1195_vm2, %v3197_v2 }
0x159b   : > { %4282 = vmatprep.mubr.msk.f32.mxu0 %vm4589_vm0, %v4590_v10 }
0x159d   : > { %v3349_v5 = vpop.f32.mrb[26].mxu1 }
0x159e   : > { %v3353_v6 = vsel %vm4872_vm3, -1e+30, %v3349_v5  ;;  %v4279_v7 = vpop.f32.mrb[27].mxu1 }
0x159f   : > { %v3354_v8 = vsel %vm1195_vm2, %v3353_v6, -inf }
0x15a0   : > { %3355 = vmax.xlane.f32.xlu0 %v3354_v8 }
0x15b6   : > { %3365 = vrot.lane.b32.xlu0 %v5009_v1, %s5237_s3  ;;  %s5241_s3 = sld [smem:[#allocation19_spill]] }
0x15bc   : > { %v4000_v50 = vld [vmem:[%s5241_s3] ss:$0 sm:$0xff]  ;;  %s5245_s3 = sld [smem:[#allocation25_spill]] }
0x162d   : > { %v3356_v9 = vpop.xlane.xlu0 %3355 }
0x162e   : > { %v3357_v11 = vsub.f32 %v3353_v6, %v3356_v9 }
0x1630   : > { %v3358_v12 = vmul.f32 1.442695, %v3357_v11  ;;  %v3738_v11 = vld [vmem:[#allocation2] sm:$0x1] }
0x1631   : > { %v3366_v13 = vpop.permute.xlu0 %3365 }
0x1632   : > { %4480 = vpow2.f32 %v3358_v12  ;;  %4281 = vmatpush3.msra.mxu0 %v3366_v13  ;;  %v4598_v12 = vmov 0  }
0x1633   : > { %4353 = vmatprep.subr.bf16.mxu0 %v4588_v4  ;;  %4447 = vset.pattern.permute.xlu0 %v4598_v12 }
0x1634   : > { %3741 = vperm.xlu0 %4447, %v3738_v11  }
0x163c   : > { %v4481_v14 = vpop.eup %4480 }
0x163d   : > { %v3360_v30 = vsel %vm1195_vm2, %v4481_v14, 0.0 }
0x163e   : > { %3361 = vadd.xlane.f32.xlu1 %v3360_v30 }
0x166d   : > { %v3270_v17 = vpop.f32.mrb[26].mxu0 }
0x166e   : > { %v3274_v18 = vadd.f32 %v3270_v17, %v3032_v47  ;;  %v4274_v1 = vpop.f32.mrb[27].mxu0  ;;  %v4006_v17 = vld [vmem:[%s5245_s3] ss:$0 sm:$0xff]  ;;  %s3845_s3 = sshll.u32 %s991_s15, 4  ;;  %s5139_s3 = int_to_ptr.vmem [resolvable:$true] %s3845_s3 }
0x166f   : > { %v4007_v1 = vld [vmem:[%s5246_s4] ss:$0 sm:$0xff]  ;;  %s5137_s4 = scalar_lea.hbm %s4766_s27, %s4011_s6  ;;  %s4492_s9 = scalar_lea.vmem %s5139_s3, 16 }
0x1670   : > { %p4493_p11 = scmp.ne.s32.totalorder %s5139_s3, %s4492_s9  ;;  %p4499_p0 = scmp.lt.s32.totalorder %s5139_s3, %s4497_s0 }
0x1672   : > { %p4494_p12 = pnand %p4493_p11, %p4806_p5 }
0x1674   : > { %p4495_p13 = pneg %p4494_p12 }
0x16cb   : > { %v3362_v19 = vpop.xlane.xlu1 %3361 }
0x16cc   : > { %4482 = vrcp.f32 %v3362_v19 }
0x16d6   : > { %v4483_v21 = vpop.eup %4482 }
0x16d7   : > { %v3364_v22 = vmul.f32 %v4483_v21, %v4481_v14 }
0x16d9   : > { %4283 = vmatmul.mubr.msk.f32.vlgmr.msra.gmra.mrb[28].mxu0 %vm1195_vm2, %v3364_v22  ;;  %v3737_v22 = vld [vmem:[%s5247_s12] sm:$0x1]  ;;  %s4498_s12 = scalar_lea.vmem %s4497_s0, 32 }
0x16da   : > { %4298 = vmatprep.mubr.msk.f32.mxu0 %vm4589_vm0, %v4590_v10  ;;  %4355 = vmatpush3.bf16.msra.mxu0 %v4354_v41  ;;  %p4500_p1 = scmp.lt.s32.totalorder %s4498_s12, %s4492_s9 }
0x16db   : > { %4356 = vmatprep.subr.bf16.mxu0 %v4588_v4 }
0x16dc   : > { %p4501_p2 = por %p4500_p1, %p4499_p0 }
0x16de   : > { %p4502_p3 = pnand %p4501_p2, %p4495_p13 }
0x17ac   : > { %v3437_v24 = vpop.f32.mrb[28].mxu0 }
0x17ad   : > { %v4284_v23 = vpop.f32.mrb[29].mxu0  ;;  %4288 = vmatmul.mubr.msk.f32.vlgmr.msra.gmra.mrb[28].mxu1 %vm1195_vm2, %v3437_v24  ;;  %v3746_v24 = vsub.s32 0, %v4869_v28 }
0x17ae   : > { %4309 = vmatprep.mubr.msk.f32.mxu1 %vm4589_vm0, %v4590_v10  ;;  %4361 = vmatpush3.bf16.msra.mxu1 %v4360_v46  ;;  %v3742_v23 = vpop.permute.xlu0 %3741 }
0x17af   : > { %4362 = vmatprep.subr.bf16.mxu1 %v4588_v4  ;;  %v4363_v4 = vpack.c.bf16 %v2400_v56, %v2399_v55 }
0x17b2   : > { %4364 = vmatpush3.bf16.msra.mxu1 %v4363_v4 }
0x1880   : > { %v3510_v26 = vpop.f32.mrb[28].mxu1 }
0x1881   : > { %v3514_v27 = vadd.f32 %v3510_v26, %v3274_v18  ;;  %v4289_v29 = vpop.f32.mrb[29].mxu1 }
0x1883   : > { %v3521_v31 = vadd.f32 %v3999_v25, %v3514_v27  ;;  %v3747_v25 = vrot.slane %v3742_v23, %v3746_v24 }
0x1885   : > { %v3522_v32 = vadd.f32 %v3521_v31, %v4836_v16  ;;  %v4357_v16 = vpack.c.bf16 %v2395_v43, %v2394_v42 }
0x1887   : > { %v3523_v33 = vsel %vm1042_vm1, %v3522_v32, 0.0  ;;  %4358 = vmatpush3.bf16.msra.mxu0 %v4357_v16 }
0x1888   : > { %3524 = vadd.xlane.f32.xlu1 %v3523_v33  ;;  %4312 = vmatprep.subr.mxu0 %v4590_v10 }
0x1915   : > { %v3525_v34 = vpop.xlane.xlu1 %3524 }
0x1916   : > { %v3526_v35 = vmul.f32 0.03125, %v3525_v34 }
0x1918   : > { %v3527_v36 = vsub.f32 %v3522_v32, %v3526_v35 }
0x191a   : > { %v3528_v37 = vmul.f32 %v3527_v36, %v3527_v36 }
0x191c   : > { %v3529_v38 = vsel %vm1042_vm1, %v3528_v37, 0.0 }
0x191d   : > { %3530 = vadd.xlane.f32.xlu1 %v3529_v38 }
0x19aa   : > { %v3531_v20 = vpop.xlane.xlu1 %3530 }
0x19ab   : > { %v3532_v47 = vmul.f32 0.03125, %v3531_v20 }
0x19ad   : > { %v3533_v48 = vadd.f32 1e-05, %v3532_v47 }
0x19af   : > { %4484 = vrsqrt.f32 %v3533_v48 }
0x19b9   : > { %v4485_v49 = vpop.eup %4484 }
0x19ba   : > { %v3535_v51 = vmul.f32 %v4485_v49, %v3527_v36 }
0x19bc   : > { %v3542_v53 = vmul.f32 %v4000_v50, %v3535_v51 }
0x19be   : > { %v3549_v54 = vadd.f32 %v4001_v52, %v3542_v53 }
0x19c0   : > { %4299 = vmatmul.mubr.msk.f32.vlgmr.msra.gmra.mrb[30].mxu0 %vm1042_vm1, %v3549_v54 }
0x19c1   : > { %4314 = vmatprep.mubr.msk.f32.mxu0 %vm4589_vm0, %v4590_v10 }
0x1a93   : > { %v3625_v58 = vpop.f32.mrb[30].mxu0 }
0x1a94   : > { %v3626_v59 = vadd.f32 %v4002_v57, %v3625_v58  ;;  %v4300_v60 = vpop.f32.mrb[31].mxu0 }
0x1a96   : > { %v3629_v61 = vmax.f32 %v3626_v59, 0.0 }
0x1a98   : > { %4310 = vmatmul.mubr.msk.f32.vlgmr.msra.gmra.mrb[30].mxu1 %vm1042_vm1, %v3629_v61 }
0x1b6b   : > { %v3705_v63 = vpop.f32.mrb[30].mxu1 }
0x1b6c   : > { %v3706_v0 = vadd.f32 %v4004_v62, %v3705_v63  ;;  %v4311_v2 = vpop.f32.mrb[31].mxu1 }
0x1b6e   : > { %v3709_v3 = vadd.f32 %v3706_v0, %v3549_v54 }
0x1b70   : > { %v3710_v5 = vsel %vm1042_vm1, %v3709_v3, 0.0 }
0x1b71   : > { %3711 = vadd.xlane.f32.xlu1 %v3710_v5 }
0x1bfe   : > { %v3712_v10 = vpop.xlane.xlu1 %3711 }
0x1bff   : > { %v3713_v6 = vmul.f32 0.03125, %v3712_v10 }
0x1c01   : > { %v3714_v7 = vsub.f32 %v3709_v3, %v3713_v6 }
0x1c03   : > { %v3715_v8 = vmul.f32 %v3714_v7, %v3714_v7 }
0x1c05   : > { %v3716_v9 = vsel %vm1042_vm1, %v3715_v8, 0.0 }
0x1c06   : > { %3717 = vadd.xlane.f32.xlu1 %v3716_v9 }
0x1c93   : > { %v3718_v13 = vpop.xlane.xlu1 %3717 }
0x1c94   : > { %v3719_v14 = vmul.f32 0.03125, %v3718_v13 }
0x1c96   : > { %v3720_v30 = vadd.f32 1e-05, %v3719_v14 }
0x1c98   : > { %4486 = vrsqrt.f32 %v3720_v30 }
0x1ca2   : > { %v4487_v15 = vpop.eup %4486 }
0x1ca3   : > { %v3722_v18 = vmul.f32 %v4487_v15, %v3714_v7 }
0x1ca5   : > { %v3729_v19 = vmul.f32 %v4006_v17, %v3722_v18 }
0x1ca7   : > { %v3736_v21 = vadd.f32 %v4007_v1, %v3729_v19 }
0x1ca9   : > { %4313 = vmatpush3.xpose.msk.msra.mxu0 %vm1042_vm1, %v3736_v21 }
0x1cac   : > { %4315 = vmatmul.mubr.msk.f32.vlgmr.msra.gmra.mrb[32].mxu0 %vm1042_vm1, %v3737_v22 }
0x1d7f   : > { %v3820_v26 = vpop.f32.mrb[32].mxu0 }
0x1d80   : > { %v3821_v27 = vadd.f32 %v3820_v26, %v3747_v25  ;;  %v4316_v29 = vpop.f32.mrb[33].mxu0 }
0x1d82   : > { %v4010_v31 = vmul.f32 -1.442695, %v3821_v27 }
0x1d84   : > { %4488 = vpow2.f32 %v4010_v31 }
0x1d8e   : > { %v4489_v32 = vpop.eup %4488 }
0x1d8f   : > { %v3827_v33 = vadd.f32 1.0, %v4489_v32 }
0x1d91   : > { %4490 = vrcp.f32 %v3827_v33 }
0x1d9b   : > { %v4491_v28 = vpop.eup %4490 }
0x1d9c   : > { %3831 = vst.msk [vmem:[%s991_s15] sm:$0x1] %vm3830_vm4, %v4491_v28 }
0x1d9d   : > { %4505 = shalt.err (!%p4502_p3)
}
0x1d9e   : > { %s4506_s8 = scalar_lea.hbm %s5137_s4, 16  ;;  %s4510_s11 = scalar_lea.hbm %s4766_s27, 32 }
0x1d9f   : > { %p4507_p4 = scmp.ne.s32.totalorder %s5137_s4, %s4506_s8  ;;  %p4511_p9 = scmp.lt.u32.totalorder %s5137_s4, %s4766_s27 }
0x1da0   : > { %p4512_p10 = scmp.lt.u32.totalorder %s4510_s11, %s4506_s8  ;;  %p4514_p12 = scmp.lt.u32.totalorder %s4506_s8, %s5137_s4 }
0x1da1   : > { %p4508_p7 = pnand %p4507_p4, %p4806_p5 }
0x1da2   : > { %p4513_p11 = por %p4512_p10, %p4511_p9 }
0x1da3   : > { %p4509_p8 = pneg %p4508_p7 }
0x1da4   : > { %p4515_p0 = por %p4514_p12, %p4513_p11 }
0x1da6   : > { %p4516_p13 = pnand %p4515_p0, %p4509_p8 }
0x1da8   : > { %4519 = shalt.err (!%p4516_p13)
}
0x1da9   : > { %4365 = dma.vmem_to_hbm [thread:$0]  (%p4806_p5), %s5139_s3, 16, %s5137_s4, %s3833_s5  }
0x1daa PF: > { %p4371_p1 = scmp.ge.s32.totalorder %s4554_s7, 2  ;;  %s3857_s9 = sand.u32 1, %s4542_s28  }
0x1dab   : > { %s3858_s12 = scalar_lea.sflag [#allocation4], %s3857_s9 }
0x1dac   : > { %p4368_p2 = pnand %p4371_p1, %p4810_p6 }
0x1dae   : > { %4537 = dma.done.wait (!%p4368_p2), %s3858_s12, 16  }
0x1daf   : > { %4539 = vsyncadd (!%p4368_p2), %s3858_s12, 4294967280  ;;  %p77_p3 = scmp.ge.s32.totalorder %s4793_s10, 4   ;;  %s5248_s28 = smov %s4546_s1 }
0x1db0   : > { %s5249_s1 = smov %s4550_s2  ;;  %s5250_s2 = smov %s4804_s16 }
0x1db1   : > { %s5251_s7 = smov %s4793_s10  ;;  %79 = sbr.rel (!%p77_p3) target bundleno = 71 (0x47), region = 218 }
0x1db8   :  { %3862 = vsyncpa [#allocation4], 1 }
0x1db9   :  { %3864 = vsyncpa [#allocation4 + $0x1], 1 }

</bundles_post_ra>
